<compile_context>
chip_gen: v7x
topology: tpu7x:2x2x1
jax: 0.10.0
libtpu: 0.0.40
codegen_flags: <defaults>
</compile_context>

<pallas_src>
import jax
import jax.numpy as jnp
from jax import lax
from jax.experimental import pallas as pl
from jax.experimental.pallas import tpu as pltpu


# ----------------------------------------------------------------------------
# tiling / VMEM configuration
# ----------------------------------------------------------------------------
_TM_TARGET = 512      # row tile (sublane axis)
_TN_TARGET = 1024     # output-column tile (lane axis)
_TK_TARGET = 1024     # reduction tile
_TQ_TARGET = 256      # attention query tile


def _derive_vmem_limit():
    """Generation-aware scoped-VMEM budget: 3/4 of physical VMEM (48 MiB on v7x,
    96 MiB on v5e/v6e); falls back to 48 MiB if the query is unavailable."""
    cap = 64 * 1024 * 1024
    try:
        info = pltpu.get_tpu_info()
        cap = int(getattr(info, "vmem_capacity_bytes", cap)) or cap
    except Exception:
        pass
    return (cap * 3) // 4


_VMEM_LIMIT_BYTES = _derive_vmem_limit()


def _round_up(x, m):
    return ((x + m - 1) // m) * m


def _row_tile(dim, target):
    """Row (sublane) tiling: prefer zero-padding up to a big tile over shrinking it.
    Returns (tile, padded_dim)."""
    if dim <= target:
        t = _round_up(dim, 8)
        return t, t
    return target, _round_up(dim, target)


def _col_tile(dim, target):
    """Lane-axis tiling: full dim when it fits, else the largest 128-multiple divisor
    <= target (keeps e.g. 2304 -> 768 without padding), else pad to the target."""
    if dim <= target:
        return dim, dim
    for t in range(target, 127, -128):
        if dim % t == 0:
            return t, dim
    return target, _round_up(dim, target)


def _pad_to(a, shape):
    pads = [(0, s - d) for d, s in zip(a.shape, shape)]
    if all(p == (0, 0) for p in pads):
        return a
    return jnp.pad(a, pads)


def _pad_axis(a, axis, size):
    if a.shape[axis] == size:
        return a
    widths = [(0, 0)] * a.ndim
    widths[axis] = (0, size - a.shape[axis])
    return jnp.pad(a, widths)


# ----------------------------------------------------------------------------
# standalone LayerNorm kernel (fallback only; the hot path fuses LN into the matmul)
# ----------------------------------------------------------------------------
def _make_layernorm_kernel(eps):
    def kernel(x_ref, g_ref, b_ref, o_ref):
        x = x_ref[...].astype(jnp.float32)
        mu = jnp.mean(x, axis=-1, keepdims=True)
        xc = x - mu
        var = jnp.mean(xc * xc, axis=-1, keepdims=True)
        inv = lax.rsqrt(var + eps)
        o_ref[...] = (xc * inv * g_ref[...] + b_ref[...]).astype(o_ref.dtype)
    return kernel


def pallas_layernorm(x, gamma, beta, *, eps=1e-5, out_dtype=jnp.bfloat16):
    """Row-wise LayerNorm over the last dim of (M, C).  Padded rows are all-zero and
    merely produce rsqrt(eps)-scaled garbage that is sliced off afterwards."""
    M, C = x.shape
    tm, Mp = _row_tile(M, _TM_TARGET)
    xp = _pad_to(x, (Mp, C))
    g2 = gamma.reshape(1, C).astype(jnp.float32)
    b2 = beta.reshape(1, C).astype(jnp.float32)
    out = pl.pallas_call(
        _make_layernorm_kernel(eps),
        grid=(Mp // tm,),
        in_specs=[
            pl.BlockSpec((tm, C), lambda i: (i, 0)),
            pl.BlockSpec((1, C), lambda i: (0, 0)),
            pl.BlockSpec((1, C), lambda i: (0, 0)),
        ],
        out_specs=pl.BlockSpec((tm, C), lambda i: (i, 0)),
        out_shape=jax.ShapeDtypeStruct((Mp, C), out_dtype),
        compiler_params=pltpu.CompilerParams(
            dimension_semantics=("parallel",),
            vmem_limit_bytes=_VMEM_LIMIT_BYTES),
    )(xp, g2, b2)
    return out[:M] if Mp != M else out


# ----------------------------------------------------------------------------
# tiled matmul kernel (fused LayerNorm prologue / bias / GELU / residual epilogue)
# ----------------------------------------------------------------------------
def _make_matmul_kernel(has_ln, has_bias, has_res, activation, eps):
    def kernel(*refs):
        idx = 0
        x_ref = refs[idx]; idx += 1
        w_ref = refs[idx]; idx += 1
        if has_ln:
            g_ref = refs[idx]; idx += 1
            bln_ref = refs[idx]; idx += 1
        if has_bias:
            b_ref = refs[idx]; idx += 1
        if has_res:
            r_ref = refs[idx]; idx += 1
        o_ref = refs[idx]
        acc_ref = refs[idx + 1]

        @pl.when(pl.program_id(2) == 0)
        def _init():
            acc_ref[...] = jnp.zeros_like(acc_ref)

        if has_ln:
            # Fused LayerNorm prologue (requires tk == K).  All-zero padded rows just
            # produce garbage rows that the wrapper slices off.
            xv = x_ref[...].astype(jnp.float32)
            mu = jnp.mean(xv, axis=-1, keepdims=True)
            xc = xv - mu
            var = jnp.mean(xc * xc, axis=-1, keepdims=True)
            xv = (xc * lax.rsqrt(var + eps) * g_ref[...] + bln_ref[...]
                  ).astype(jnp.bfloat16)
        else:
            xv = x_ref[...]

        acc_ref[...] += jnp.dot(xv, w_ref[...], preferred_element_type=jnp.float32)

        @pl.when(pl.program_id(2) == pl.num_programs(2) - 1)
        def _finalize():
            out = acc_ref[...]
            if has_bias:
                out = out + b_ref[...].astype(jnp.float32)
            if activation == "gelu":
                # TODO(synk): torch nn.GELU defaults to the exact erf form; the tanh
                # approximation (max deviation ~3e-3) is used because tanh lowers to the EUP.
                c = 0.7978845608028654  # sqrt(2/pi)
                out = 0.5 * out * (1.0 + jnp.tanh(c * (out + 0.044715 * out * out * out)))
            if has_res:
                out = out + r_ref[...].astype(jnp.float32)
            o_ref[...] = out.astype(o_ref.dtype)

    return kernel


def pallas_matmul(x, w, *, ln=None, bias=None, residual=None, activation=None,
                  out_dtype=jnp.bfloat16, eps=1e-5):
    """Tiled x @ w with optional fused LayerNorm prologue (over the full K axis) and
    fused bias / GELU / residual epilogue.  bf16 MXU operands, f32 VMEM accumulator,
    reduction axis innermost ("arbitrary"); i/j "parallel" for megacore sharding."""
    M, K = x.shape
    K2, Nout = w.shape
    assert K == K2
    tm, Mp = _row_tile(M, _TM_TARGET)
    tn, Np = _col_tile(Nout, _TN_TARGET)
    if ln is not None:
        # LN needs the whole reduction axis in one tile (true for DINO dims <= 1024).
        assert K <= _TK_TARGET, "LN fusion requires K to fit a single k-tile"
        tk, Kp = K, K
    else:
        tk, Kp = _col_tile(K, _TK_TARGET)

    xp = _pad_to(x, (Mp, Kp))
    wp = _pad_to(w, (Kp, Np))

    in_specs = [pl.BlockSpec((tm, tk), lambda i, j, k: (i, k)),
                pl.BlockSpec((tk, tn), lambda i, j, k: (k, j))]
    args = [xp, wp]
    if ln is not None:
        g, b = ln
        in_specs += [pl.BlockSpec((1, K), lambda i, j, k: (0, 0)),
                     pl.BlockSpec((1, K), lambda i, j, k: (0, 0))]
        args += [g.reshape(1, K).astype(jnp.float32),
                 b.reshape(1, K).astype(jnp.float32)]
    if bias is not None:
        in_specs.append(pl.BlockSpec((1, tn), lambda i, j, k: (0, j)))
        args.append(_pad_to(bias.reshape(1, Nout).astype(jnp.float32), (1, Np)))
    if residual is not None:
        in_specs.append(pl.BlockSpec((tm, tn), lambda i, j, k: (i, j)))
        args.append(_pad_to(residual, (Mp, Np)))

    out = pl.pallas_call(
        _make_matmul_kernel(ln is not None, bias is not None, residual is not None,
                            activation, eps),
        grid=(Mp // tm, Np // tn, Kp // tk),
        in_specs=in_specs,
        out_specs=pl.BlockSpec((tm, tn), lambda i, j, k: (i, j)),
        out_shape=jax.ShapeDtypeStruct((Mp, Np), out_dtype),
        scratch_shapes=[pltpu.VMEM((tm, tn), jnp.float32)],
        compiler_params=pltpu.CompilerParams(
            dimension_semantics=("parallel", "parallel", "arbitrary"),
            vmem_limit_bytes=_VMEM_LIMIT_BYTES),
    )(*args)
    if (Mp, Np) != (M, Nout):
        out = out[:M, :Nout]
    return out


# ----------------------------------------------------------------------------
# fused attention core
# ----------------------------------------------------------------------------
def _heads_per_block(num_heads, head_dim):
    """Smallest head group whose packed width head_dim*h is lane-aligned (mult. of 128)."""
    for h in range(1, num_heads + 1):
        if num_heads % h == 0 and (h * head_dim) % 128 == 0:
            return h
    return None


def _make_attn_kernel(hpb, head_dim, n_valid, n_padded, with_attn):
    mask_keys = n_padded != n_valid

    def kernel(q_ref, k_ref, v_ref, *out_refs):
        # q_ref: (tq, hpb*head_dim) bf16; k_ref / v_ref: (n_padded, hpb*head_dim) bf16.
        # Softmax scale is pre-folded into the q-columns of w_qkv.
        if with_attn:
            attn_ref = out_refs[0]
        else:
            ctx_ref = out_refs[0]
            ctx_parts = []
        for hh in range(hpb):                       # static unroll over the packed heads
            sl = slice(hh * head_dim, (hh + 1) * head_dim)
            q = q_ref[:, sl]
            k = k_ref[:, sl]
            # scores on the MXU, contracting last dims -> no materialized k.T
            s = lax.dot_general(q, k, (((1,), (1,)), ((), ())),
                                preferred_element_type=jnp.float32)     # (tq, Np)
            if mask_keys:
                col = lax.broadcasted_iota(jnp.int32, s.shape, 1)
                s = jnp.where(col < n_valid, s, -1e30)
            m = jnp.max(s, axis=-1, keepdims=True)
            p = jnp.exp(s - m)
            l = jnp.sum(p, axis=-1, keepdims=True)
            if with_attn:
                attn_ref[hh] = (p / l).astype(attn_ref.dtype)   # exact reciprocal here
            else:
                v = v_ref[:, sl]
                ctx = jnp.dot(p.astype(v.dtype), v, preferred_element_type=jnp.float32)
                # normalize AFTER the PV matmul: (tq, head_dim) mul instead of (tq, Np)
                ctx = ctx * pl.reciprocal(l, approx=True)
                ctx_parts.append(ctx.astype(ctx_ref.dtype))
        if not with_attn:
            # single lane-dense 128-wide (hpb*head_dim) store -> no masked vst
            ctx_ref[...] = jnp.concatenate(ctx_parts, axis=-1)

    return kernel


def pallas_attention(qkv, num_heads, *, return_attention=False, ctx_dtype=jnp.bfloat16):
    """Fused attention core on the raw (B, N, 3C) qkv projection output.

    q/k/v columns for each head-block are selected purely by index_map offsets and the
    context is written back in (B, N, C) layout, so no activation transpose touches HBM.
    The grid is (head_block, batch, q_tile) so the head-block axis (even for every DINO
    variant) leads for v7x dual-TensorCore sharding, and the q-tile axis bounds the f32
    score temporaries.  When return_attention=True only the bf16 probability tensor is
    produced (no dead ctx writeback)."""
    B, N, C3 = qkv.shape
    C = C3 // 3
    head_dim = C // num_heads
    hpb = _heads_per_block(num_heads, head_dim)
    if hpb is None:
        # TODO(synk): add a full-row fallback for configs where no head grouping reaches
        # a 128-lane-aligned block width (not needed for DINO variants: head_dim is 64).
        raise NotImplementedError("num_heads/head_dim cannot be grouped into 128-lane blocks")
    num_blocks = num_heads // hpb
    W = hpb * head_dim

    tq = min(_TQ_TARGET, _round_up(N, 8))
    Np = _round_up(N, tq)
    nq = Np // tq
    if Np != N:
        qkv = _pad_axis(qkv, 1, Np)   # padded key rows are masked inside the kernel

    q_spec = pl.BlockSpec((None, tq, W), lambda h, b, qi: (b, qi, h))
    k_spec = pl.BlockSpec((None, Np, W), lambda h, b, qi: (b, 0, num_blocks + h))
    v_spec = pl.BlockSpec((None, Np, W), lambda h, b, qi: (b, 0, 2 * num_blocks + h))

    if return_attention:
        out_specs = pl.BlockSpec((None, hpb, tq, Np), lambda h, b, qi: (b, h, qi, 0))
        out_shape = jax.ShapeDtypeStruct((B, num_heads, Np, Np), jnp.bfloat16)
    else:
        out_specs = pl.BlockSpec((None, tq, W), lambda h, b, qi: (b, qi, h))
        out_shape = jax.ShapeDtypeStruct((B, Np, C), ctx_dtype)

    out = pl.pallas_call(
        _make_attn_kernel(hpb, head_dim, N, Np, return_attention),
        grid=(num_blocks, B, nq),
        in_specs=[q_spec, k_spec, v_spec],
        out_specs=out_specs,
        out_shape=out_shape,
        compiler_params=pltpu.CompilerParams(
            dimension_semantics=("parallel", "parallel", "parallel"),
            vmem_limit_bytes=_VMEM_LIMIT_BYTES),
    )(qkv, qkv, qkv)

    if return_attention:
        return out[:, :, :N, :N] if Np != N else out
    return out[:, :N, :] if Np != N else out


# ----------------------------------------------------------------------------
# parameter preparation (hoisted out of the per-call forward)
# ----------------------------------------------------------------------------
def prepare_params(params, num_heads):
    """One-time weight prep: bf16 casts for the MXU and the softmax scale folded into the
    q-columns of w_qkv (exact for power-of-two scales such as head_dim=64 -> 0.125)."""
    C = params["w_qkv"].shape[0]
    head_dim = C // num_heads
    scale = head_dim ** (-0.5)
    p = dict(params)
    p["w_qkv"] = (params["w_qkv"].at[:, :C].multiply(scale)).astype(jnp.bfloat16)
    p["w_proj"] = params["w_proj"].astype(jnp.bfloat16)
    p["w_fc1"] = params["w_fc1"].astype(jnp.bfloat16)
    p["w_fc2"] = params["w_fc2"].astype(jnp.bfloat16)
    return p


# ----------------------------------------------------------------------------
# Block forward
# ----------------------------------------------------------------------------
def block_forward(x, params, num_heads, return_attention=False):
    """Pallas implementation of Block.forward (eval semantics: dropout/drop_path = 0).
    `params` must come from prepare_params (bf16 weights, scale folded)."""
    B, N, C = x.shape
    M = B * N
    x2d = x.reshape(M, C)                                   # f32 residual stream
    fuse_ln = C <= _TK_TARGET                               # true for all DINO dims

    # norm1 fused into the qkv projection (no bias: qkv_bias=False)
    if fuse_ln:
        qkv2d = pallas_matmul(x2d, params["w_qkv"],
                              ln=(params["g1"], params["b1"]),
                              out_dtype=jnp.bfloat16)                  # (M, 3C) bf16
    else:
        h1 = pallas_layernorm(x2d, params["g1"], params["b1"])
        qkv2d = pallas_matmul(h1, params["w_qkv"], out_dtype=jnp.bfloat16)
    qkv = qkv2d.reshape(B, N, 3 * C)

    if return_attention:
        return pallas_attention(qkv, num_heads, return_attention=True)  # (B, H, N, N)

    ctx = pallas_attention(qkv, num_heads)                               # (B, N, C) bf16
    # attention output projection, fused with bias + first residual add
    x_attn = pallas_matmul(ctx.reshape(M, C), params["w_proj"],
                           bias=params["b_proj"], residual=x2d,
                           out_dtype=jnp.float32)                        # (M, C) f32

    # norm2 fused into fc1 (+ bias + GELU); fc2 fused with bias + second residual
    if fuse_ln:
        hidden = pallas_matmul(x_attn, params["w_fc1"],
                               ln=(params["g2"], params["b2"]),
                               bias=params["b_fc1"], activation="gelu",
                               out_dtype=jnp.bfloat16)                   # (M, 4C) bf16
    else:
        h2 = pallas_layernorm(x_attn, params["g2"], params["b2"])
        hidden = pallas_matmul(h2, params["w_fc1"], bias=params["b_fc1"],
                               activation="gelu", out_dtype=jnp.bfloat16)
    out = pallas_matmul(hidden, params["w_fc2"], bias=params["b_fc2"],
                        residual=x_attn, out_dtype=jnp.float32)          # (M, C) f32
    return out.reshape(B, N, C)


# ----------------------------------------------------------------------------
# synthetic params + plain-JAX reference
# ----------------------------------------------------------------------------
def make_params(key, dim, mlp_ratio=4):
    hidden = int(dim * mlp_ratio)
    ks = jax.random.split(key, 10)
    f32 = jnp.float32
    return {
        "g1": 1.0 + 0.1 * jax.random.normal(ks[0], (dim,), f32),
        "b1": 0.05 * jax.random.normal(ks[1], (dim,), f32),
        "w_qkv": jax.random.normal(ks[2], (dim, 3 * dim), f32) * dim ** -0.5,
        "w_proj": jax.random.normal(ks[3], (dim, dim), f32) * dim ** -0.5,
        "b_proj": 0.02 * jax.random.normal(ks[4], (dim,), f32),
        "g2": 1.0 + 0.1 * jax.random.normal(ks[5], (dim,), f32),
        "b2": 0.05 * jax.random.normal(ks[6], (dim,), f32),
        "w_fc1": jax.random.normal(ks[7], (dim, hidden), f32) * dim ** -0.5,
        "b_fc1": 0.02 * jax.random.normal(ks[8], (hidden,), f32),
        "w_fc2": jax.random.normal(ks[9], (hidden, dim), f32) * hidden ** -0.5,
        "b_fc2": jnp.zeros((dim,), f32),
    }


def reference_block(x, params, num_heads):
    """Plain-JAX f32 reference of Block.forward (tanh-GELU to match the kernel)."""
    B, N, C = x.shape
    D = C // num_heads
    scale = D ** (-0.5)

    def ln(z, g, b):
        mu = z.mean(-1, keepdims=True)
        var = ((z - mu) ** 2).mean(-1, keepdims=True)
        return (z - mu) / jnp.sqrt(var + 1e-5) * g + b

    h = ln(x, params["g1"], params["b1"])
    qkv = (h.reshape(B * N, C) @ params["w_qkv"]).reshape(B, N, 3, num_heads, D)
    qkv = jnp.transpose(qkv, (2, 0, 3, 1, 4))
    q, k, v = qkv[0], qkv[1], qkv[2]
    attn = jax.nn.softmax(jnp.einsum("bhnd,bhmd->bhnm", q, k) * scale, axis=-1)
    ctx = jnp.einsum("bhnm,bhmd->bhnd", attn, v)
    ctx = jnp.transpose(ctx, (0, 2, 1, 3)).reshape(B, N, C)
    x1 = x + (ctx @ params["w_proj"] + params["b_proj"])
    h2 = ln(x1, params["g2"], params["b2"])
    mlp = jax.nn.gelu(h2 @ params["w_fc1"] + params["b_fc1"], approximate=True)
    mlp = mlp @ params["w_fc2"] + params["b_fc2"]
    return x1 + mlp, attn


if __name__ == "__main__":
    # Small but layout-realistic shapes: head_dim = 64 (as in every DINO ViT variant),
    # so two heads pack into a 128-lane attention block.
    B, N, C, num_heads = 2, 16, 128, 2

    key = jax.random.PRNGKey(0)
    kx, kp = jax.random.split(key)
    x = jax.random.normal(kx, (B, N, C), dtype=jnp.float32)
    params = make_params(kp, C)
    prepped = prepare_params(params, num_heads)   # one-time bf16 cast + scale fold

    fwd = jax.jit(block_forward, static_argnums=(2, 3))
    out = fwd(x, prepped, num_heads, False)
    attn = fwd(x, prepped, num_heads, True)
    jax.block_until_ready((out, attn))

    ref_out, ref_attn = reference_block(x, params, num_heads)
    assert out.shape == (B, N, C) and attn.shape == (B, num_heads, N, N)
    # bf16 operands + approx reciprocal -> relaxed tolerances vs. the f32 reference.
    assert jnp.allclose(out, ref_out, atol=8e-2, rtol=8e-2), \
        float(jnp.max(jnp.abs(out - ref_out)))
    assert jnp.allclose(attn.astype(jnp.float32), ref_attn, atol=2e-2, rtol=2e-2), \
        float(jnp.max(jnp.abs(attn.astype(jnp.float32) - ref_attn)))

    print("KERNEL_OK")
</pallas_src>

<mosaic_0001>
module attributes {stable_mosaic.version = 11 : i64} {
  func.func @kernel(%arg0: i32, %arg1: i32, %arg2: i32, %arg3: memref<1x16x128xbf16, #tpu.memory_space<vmem>>, %arg4: memref<1x16x128xbf16, #tpu.memory_space<vmem>>, %arg5: memref<1x16x128xbf16, #tpu.memory_space<vmem>>, %arg6: memref<1x16x128xbf16, #tpu.memory_space<vmem>>) attributes {dimension_semantics = [#tpu.dimension_semantics<parallel>, #tpu.dimension_semantics<parallel>, #tpu.dimension_semantics<parallel>], iteration_bounds = array<i64: 1, 2, 1>, scalar_prefetch = 0 : i64, scratch_operands = 0 : i64, tpu.core_type = #tpu.core_type<tc>, window_params = [{transform_indices = @transform_0, window_bounds = array<i64: 1, 16, 128>}, {transform_indices = @transform_1, window_bounds = array<i64: 1, 16, 128>}, {transform_indices = @transform_2, window_bounds = array<i64: 1, 16, 128>}, {transform_indices = @transform_3, window_bounds = array<i64: 1, 16, 128>}]} {
    %c0 = arith.constant 0 : index
    %c0_0 = arith.constant 0 : index
    %c0_1 = arith.constant 0 : index
    %0 = vector.load %arg3[%c0, %c0_0, %c0_1] : memref<1x16x128xbf16, #tpu.memory_space<vmem>>, vector<1x16x64xbf16>
    %1 = vector.shape_cast %0 : vector<1x16x64xbf16> to vector<16x64xbf16>
    %c0_2 = arith.constant 0 : index
    %c0_3 = arith.constant 0 : index
    %c0_4 = arith.constant 0 : index
    %2 = vector.load %arg4[%c0_2, %c0_3, %c0_4] : memref<1x16x128xbf16, #tpu.memory_space<vmem>>, vector<1x16x64xbf16>
    %3 = vector.shape_cast %2 : vector<1x16x64xbf16> to vector<16x64xbf16>
    %cst = arith.constant dense<0.000000e+00> : vector<16x16xf32>
    %4 = tpu.matmul %1, %3, %cst {dimension_numbers = #tpu.dot_dimension_numbers<[1], [1], [0], [0], [0, 0, 1, 0], [], []>} : vector<16x64xbf16>, vector<16x64xbf16>, vector<16x16xf32> -> vector<16x16xf32>
    %cst_5 = arith.constant dense<0xFF800000> : vector<16xf32>
    %5 = vector.multi_reduction <maximumf>, %4, %cst_5 [1] : vector<16x16xf32> to vector<16xf32>
    %6 = vector.shape_cast %5 : vector<16xf32> to vector<16x1xf32>
    %7 = vector.broadcast %6 : vector<16x1xf32> to vector<16x16xf32>
    %8 = arith.subf %4, %7 : vector<16x16xf32>
    %9 = math.exp %8 : vector<16x16xf32>
    %cst_6 = arith.constant dense<0.000000e+00> : vector<16xf32>
    %10 = vector.multi_reduction <add>, %9, %cst_6 [1] : vector<16x16xf32> to vector<16xf32>
    %11 = vector.shape_cast %10 : vector<16xf32> to vector<16x1xf32>
    %c0_7 = arith.constant 0 : index
    %c0_8 = arith.constant 0 : index
    %c0_9 = arith.constant 0 : index
    %12 = vector.load %arg5[%c0_7, %c0_8, %c0_9] : memref<1x16x128xbf16, #tpu.memory_space<vmem>>, vector<1x16x64xbf16>
    %13 = vector.shape_cast %12 : vector<1x16x64xbf16> to vector<16x64xbf16>
    %14 = arith.truncf %9 : vector<16x16xf32> to vector<16x16xbf16>
    %cst_10 = arith.constant dense<0.000000e+00> : vector<16x64xf32>
    %15 = tpu.matmul %14, %13, %cst_10 {dimension_numbers = #tpu.dot_dimension_numbers<[1], [0], [0], [1], [0, 0, 1, 1], [], []>} : vector<16x16xbf16>, vector<16x64xbf16>, vector<16x64xf32> -> vector<16x64xf32>
    %16 = tpu.reciprocal %11 {approx = true} : vector<16x1xf32> -> vector<16x1xf32>
    %17 = vector.broadcast %16 : vector<16x1xf32> to vector<16x64xf32>
    %18 = arith.mulf %15, %17 : vector<16x64xf32>
    %19 = arith.truncf %18 : vector<16x64xf32> to vector<16x64xbf16>
    %c0_11 = arith.constant 0 : index
    %c0_12 = arith.constant 0 : index
    %c64 = arith.constant 64 : index
    %20 = vector.load %arg3[%c0_11, %c0_12, %c64] : memref<1x16x128xbf16, #tpu.memory_space<vmem>>, vector<1x16x64xbf16>
    %21 = vector.shape_cast %20 : vector<1x16x64xbf16> to vector<16x64xbf16>
    %c0_13 = arith.constant 0 : index
    %c0_14 = arith.constant 0 : index
    %c64_15 = arith.constant 64 : index
    %22 = vector.load %arg4[%c0_13, %c0_14, %c64_15] : memref<1x16x128xbf16, #tpu.memory_space<vmem>>, vector<1x16x64xbf16>
    %23 = vector.shape_cast %22 : vector<1x16x64xbf16> to vector<16x64xbf16>
    %cst_16 = arith.constant dense<0.000000e+00> : vector<16x16xf32>
    %24 = tpu.matmul %21, %23, %cst_16 {dimension_numbers = #tpu.dot_dimension_numbers<[1], [1], [0], [0], [0, 0, 1, 0], [], []>} : vector<16x64xbf16>, vector<16x64xbf16>, vector<16x16xf32> -> vector<16x16xf32>
    %cst_17 = arith.constant dense<0xFF800000> : vector<16xf32>
    %25 = vector.multi_reduction <maximumf>, %24, %cst_17 [1] : vector<16x16xf32> to vector<16xf32>
    %26 = vector.shape_cast %25 : vector<16xf32> to vector<16x1xf32>
    %27 = vector.broadcast %26 : vector<16x1xf32> to vector<16x16xf32>
    %28 = arith.subf %24, %27 : vector<16x16xf32>
    %29 = math.exp %28 : vector<16x16xf32>
    %cst_18 = arith.constant dense<0.000000e+00> : vector<16xf32>
    %30 = vector.multi_reduction <add>, %29, %cst_18 [1] : vector<16x16xf32> to vector<16xf32>
    %31 = vector.shape_cast %30 : vector<16xf32> to vector<16x1xf32>
    %c0_19 = arith.constant 0 : index
    %c0_20 = arith.constant 0 : index
    %c64_21 = arith.constant 64 : index
    %32 = vector.load %arg5[%c0_19, %c0_20, %c64_21] : memref<1x16x128xbf16, #tpu.memory_space<vmem>>, vector<1x16x64xbf16>
    %33 = vector.shape_cast %32 : vector<1x16x64xbf16> to vector<16x64xbf16>
    %34 = arith.truncf %29 : vector<16x16xf32> to vector<16x16xbf16>
    %cst_22 = arith.constant dense<0.000000e+00> : vector<16x64xf32>
    %35 = tpu.matmul %34, %33, %cst_22 {dimension_numbers = #tpu.dot_dimension_numbers<[1], [0], [0], [1], [0, 0, 1, 1], [], []>} : vector<16x16xbf16>, vector<16x64xbf16>, vector<16x64xf32> -> vector<16x64xf32>
    %36 = tpu.reciprocal %31 {approx = true} : vector<16x1xf32> -> vector<16x1xf32>
    %37 = vector.broadcast %36 : vector<16x1xf32> to vector<16x64xf32>
    %38 = arith.mulf %35, %37 : vector<16x64xf32>
    %39 = arith.truncf %38 : vector<16x64xf32> to vector<16x64xbf16>
    %40 = tpu.concatenate %19, %39 in 1 : vector<16x64xbf16>, vector<16x64xbf16> -> vector<16x128xbf16>
    %c0_23 = arith.constant 0 : index
    %c0_24 = arith.constant 0 : index
    %c0_25 = arith.constant 0 : index
    %41 = vector.load %arg6[%c0_23, %c0_24, %c0_25] : memref<1x16x128xbf16, #tpu.memory_space<vmem>>, vector<1x16x128xbf16>
    %42 = vector.shape_cast %41 : vector<1x16x128xbf16> to vector<16x128xbf16>
    %43 = vector.shape_cast %40 : vector<16x128xbf16> to vector<1x16x128xbf16>
    tpu.vector_store %arg6[%c0_23, %c0_24, %c0_25], %43 {strides = array<i32>} : memref<1x16x128xbf16, #tpu.memory_space<vmem>>, vector<1x16x128xbf16>,
    return
  }
  func.func @transform_0(%arg0: i32, %arg1: i32, %arg2: i32) -> (i32, i32, i32) {
    %c0_i32 = arith.constant 0 : i32
    return %arg1, %arg2, %arg0 : i32, i32, i32
  }
  func.func @transform_1(%arg0: i32, %arg1: i32, %arg2: i32) -> (i32, i32, i32) {
    %c1_i32 = arith.constant 1 : i32
    %0 = arith.addi %c1_i32, %arg0 : i32
    %c0_i32 = arith.constant 0 : i32
    %c0_i32_0 = arith.constant 0 : i32
    return %arg1, %c0_i32, %0 : i32, i32, i32
  }
  func.func @transform_2(%arg0: i32, %arg1: i32, %arg2: i32) -> (i32, i32, i32) {
    %c2_i32 = arith.constant 2 : i32
    %0 = arith.addi %c2_i32, %arg0 : i32
    %c0_i32 = arith.constant 0 : i32
    %c0_i32_0 = arith.constant 0 : i32
    return %arg1, %c0_i32, %0 : i32, i32, i32
  }
  func.func @transform_3(%arg0: i32, %arg1: i32, %arg2: i32) -> (i32, i32, i32) {
    %c0_i32 = arith.constant 0 : i32
    return %arg1, %arg2, %arg0 : i32, i32, i32
  }
}

module attributes {stable_mosaic.version = 11 : i64} {
  func.func @kernel(%arg0: i32, %arg1: i32, %arg2: i32, %arg3: memref<32x128xf32, #tpu.memory_space<vmem>>, %arg4: memref<128x512xbf16, #tpu.memory_space<vmem>>, %arg5: memref<1x128xf32, #tpu.memory_space<vmem>>, %arg6: memref<1x128xf32, #tpu.memory_space<vmem>>, %arg7: memref<1x512xf32, #tpu.memory_space<vmem>>, %arg8: memref<32x512xbf16, #tpu.memory_space<vmem>>, %arg9: memref<32x512xf32, #tpu.memory_space<vmem>>) attributes {dimension_semantics = [#tpu.dimension_semantics<parallel>, #tpu.dimension_semantics<parallel>, #tpu.dimension_semantics<arbitrary>], iteration_bounds = array<i64: 1, 1, 1>, scalar_prefetch = 0 : i64, scratch_operands = 1 : i64, tpu.core_type = #tpu.core_type<tc>, window_params = [{transform_indices = @transform_0, window_bounds = array<i64: 32, 128>}, {transform_indices = @transform_1, window_bounds = array<i64: 128, 512>}, {pipeline_mode = #tpu.pipeline_mode<synchronous>, transform_indices = @transform_2, window_bounds = array<i64: 1, 128>}, {pipeline_mode = #tpu.pipeline_mode<synchronous>, transform_indices = @transform_3, window_bounds = array<i64: 1, 128>}, {transform_indices = @transform_4, window_bounds = array<i64: 1, 512>}, {transform_indices = @transform_5, window_bounds = array<i64: 32, 512>}]} {
    %c0_i32 = arith.constant 0 : i32
    %0 = arith.cmpi eq, %arg2, %c0_i32 : i32
    %1 = arith.extui %0 : i1 to i32
    %c0_i32_0 = arith.constant 0 : i32
    %2 = arith.cmpi ne, %1, %c0_i32_0 : i32
    scf.if %2 {
      %cst_19 = arith.constant 0.000000e+00 : f32
      %35 = vector.broadcast %cst_19 : f32 to vector<32x512xf32>
      %c0_20 = arith.constant 0 : index
      %c0_21 = arith.constant 0 : index
      %36 = vector.load %arg9[%c0_20, %c0_21] : memref<32x512xf32, #tpu.memory_space<vmem>>, vector<32x512xf32>
      tpu.vector_store %arg9[%c0_20, %c0_21], %35 {strides = array<i32>} : memref<32x512xf32, #tpu.memory_space<vmem>>, vector<32x512xf32>,
    } else {
    }
    %c0 = arith.constant 0 : index
    %c0_1 = arith.constant 0 : index
    %3 = vector.load %arg3[%c0, %c0_1] : memref<32x128xf32, #tpu.memory_space<vmem>>, vector<32x128xf32>
    %cst = arith.constant dense<0.000000e+00> : vector<32xf32>
    %4 = vector.multi_reduction <add>, %3, %cst [1] : vector<32x128xf32> to vector<32xf32>
    %5 = vector.shape_cast %4 : vector<32xf32> to vector<32x1xf32>
    %cst_2 = arith.constant 1.280000e+02 : f32
    %6 = vector.broadcast %cst_2 : f32 to vector<32x1xf32>
    %7 = arith.divf %5, %6 : vector<32x1xf32>
    %8 = vector.broadcast %7 : vector<32x1xf32> to vector<32x128xf32>
    %9 = arith.subf %3, %8 : vector<32x128xf32>
    %10 = arith.mulf %9, %9 : vector<32x128xf32>
    %cst_3 = arith.constant dense<0.000000e+00> : vector<32xf32>
    %11 = vector.multi_reduction <add>, %10, %cst_3 [1] : vector<32x128xf32> to vector<32xf32>
    %12 = vector.shape_cast %11 : vector<32xf32> to vector<32x1xf32>
    %cst_4 = arith.constant 1.280000e+02 : f32
    %13 = vector.broadcast %cst_4 : f32 to vector<32x1xf32>
    %14 = arith.divf %12, %13 : vector<32x1xf32>
    %cst_5 = arith.constant 9.99999974E-6 : f32
    %15 = vector.broadcast %cst_5 : f32 to vector<32x1xf32>
    %16 = arith.addf %14, %15 : vector<32x1xf32>
    %17 = math.rsqrt %16 : vector<32x1xf32>
    %18 = vector.broadcast %17 : vector<32x1xf32> to vector<32x128xf32>
    %19 = arith.mulf %9, %18 : vector<32x128xf32>
    %c0_6 = arith.constant 0 : index
    %c0_7 = arith.constant 0 : index
    %20 = vector.load %arg5[%c0_6, %c0_7] : memref<1x128xf32, #tpu.memory_space<vmem>>, vector<1x128xf32>
    %21 = vector.broadcast %20 : vector<1x128xf32> to vector<32x128xf32>
    %22 = arith.mulf %19, %21 : vector<32x128xf32>
    %c0_8 = arith.constant 0 : index
    %c0_9 = arith.constant 0 : index
    %23 = vector.load %arg6[%c0_8, %c0_9] : memref<1x128xf32, #tpu.memory_space<vmem>>, vector<1x128xf32>
    %24 = vector.broadcast %23 : vector<1x128xf32> to vector<32x128xf32>
    %25 = arith.addf %22, %24 : vector<32x128xf32>
    %26 = arith.truncf %25 : vector<32x128xf32> to vector<32x128xbf16>
    %c0_10 = arith.constant 0 : index
    %c0_11 = arith.constant 0 : index
    %27 = vector.load %arg9[%c0_10, %c0_11] : memref<32x512xf32, #tpu.memory_space<vmem>>, vector<32x512xf32>
    %c0_12 = arith.constant 0 : index
    %c0_13 = arith.constant 0 : index
    %28 = vector.load %arg4[%c0_12, %c0_13] : memref<128x512xbf16, #tpu.memory_space<vmem>>, vector<128x512xbf16>
    %cst_14 = arith.constant dense<0.000000e+00> : vector<32x512xf32>
    %29 = tpu.matmul %26, %28, %cst_14 {dimension_numbers = #tpu.dot_dimension_numbers<[1], [0], [0], [1], [0, 0, 1, 1], [], []>} : vector<32x128xbf16>, vector<128x512xbf16>, vector<32x512xf32> -> vector<32x512xf32>
    %30 = arith.addf %27, %29 : vector<32x512xf32>
    %c0_15 = arith.constant 0 : index
    %c0_16 = arith.constant 0 : index
    %31 = vector.load %arg9[%c0_15, %c0_16] : memref<32x512xf32, #tpu.memory_space<vmem>>, vector<32x512xf32>
    tpu.vector_store %arg9[%c0_15, %c0_16], %30 {strides = array<i32>} : memref<32x512xf32, #tpu.memory_space<vmem>>, vector<32x512xf32>,
    %c0_i32_17 = arith.constant 0 : i32
    %32 = arith.cmpi eq, %arg2, %c0_i32_17 : i32
    %33 = arith.extui %32 : i1 to i32
    %c0_i32_18 = arith.constant 0 : i32
    %34 = arith.cmpi ne, %33, %c0_i32_18 : i32
    scf.if %34 {
      %c0_19 = arith.constant 0 : index
      %c0_20 = arith.constant 0 : index
      %35 = vector.load %arg9[%c0_19, %c0_20] : memref<32x512xf32, #tpu.memory_space<vmem>>, vector<32x512xf32>
      %c0_21 = arith.constant 0 : index
      %c0_22 = arith.constant 0 : index
      %36 = vector.load %arg7[%c0_21, %c0_22] : memref<1x512xf32, #tpu.memory_space<vmem>>, vector<1x512xf32>
      %37 = vector.broadcast %36 : vector<1x512xf32> to vector<32x512xf32>
      %38 = arith.addf %35, %37 : vector<32x512xf32>
      %cst_23 = arith.constant 5.000000e-01 : f32
      %39 = vector.broadcast %cst_23 : f32 to vector<32x512xf32>
      %40 = arith.mulf %39, %38 : vector<32x512xf32>
      %cst_24 = arith.constant 4.471500e-02 : f32
      %41 = vector.broadcast %cst_24 : f32 to vector<32x512xf32>
      %42 = arith.mulf %41, %38 : vector<32x512xf32>
      %43 = arith.mulf %42, %38 : vector<32x512xf32>
      %44 = arith.mulf %43, %38 : vector<32x512xf32>
      %45 = arith.addf %38, %44 : vector<32x512xf32>
      %cst_25 = arith.constant 0.797884583 : f32
      %46 = vector.broadcast %cst_25 : f32 to vector<32x512xf32>
      %47 = arith.mulf %46, %45 : vector<32x512xf32>
      %48 = math.tanh %47 : vector<32x512xf32>
      %cst_26 = arith.constant 1.000000e+00 : f32
      %49 = vector.broadcast %cst_26 : f32 to vector<32x512xf32>
      %50 = arith.addf %49, %48 : vector<32x512xf32>
      %51 = arith.mulf %40, %50 : vector<32x512xf32>
      %52 = arith.truncf %51 : vector<32x512xf32> to vector<32x512xbf16>
      %c0_27 = arith.constant 0 : index
      %c0_28 = arith.constant 0 : index
      %53 = vector.load %arg8[%c0_27, %c0_28] : memref<32x512xbf16, #tpu.memory_space<vmem>>, vector<32x512xbf16>
      tpu.vector_store %arg8[%c0_27, %c0_28], %52 {strides = array<i32>} : memref<32x512xbf16, #tpu.memory_space<vmem>>, vector<32x512xbf16>,
    } else {
    }
    return
  }
  func.func @transform_0(%arg0: i32, %arg1: i32, %arg2: i32) -> (i32, i32) {
    %c0_i32 = arith.constant 0 : i32
    return %arg0, %arg2 : i32, i32
  }
  func.func @transform_1(%arg0: i32, %arg1: i32, %arg2: i32) -> (i32, i32) {
    %c0_i32 = arith.constant 0 : i32
    return %arg2, %arg1 : i32, i32
  }
  func.func @transform_2(%arg0: i32, %arg1: i32, %arg2: i32) -> (i32, i32) {
    %c0_i32 = arith.constant 0 : i32
    %c0_i32_0 = arith.constant 0 : i32
    %c0_i32_1 = arith.constant 0 : i32
    return %c0_i32, %c0_i32_0 : i32, i32
  }
  func.func @transform_3(%arg0: i32, %arg1: i32, %arg2: i32) -> (i32, i32) {
    %c0_i32 = arith.constant 0 : i32
    %c0_i32_0 = arith.constant 0 : i32
    %c0_i32_1 = arith.constant 0 : i32
    return %c0_i32, %c0_i32_0 : i32, i32
  }
  func.func @transform_4(%arg0: i32, %arg1: i32, %arg2: i32) -> (i32, i32) {
    %c0_i32 = arith.constant 0 : i32
    %c0_i32_0 = arith.constant 0 : i32
    return %c0_i32, %arg1 : i32, i32
  }
  func.func @transform_5(%arg0: i32, %arg1: i32, %arg2: i32) -> (i32, i32) {
    %c0_i32 = arith.constant 0 : i32
    return %arg0, %arg1 : i32, i32
  }
}

module attributes {stable_mosaic.version = 11 : i64} {
  func.func @kernel(%arg0: i32, %arg1: i32, %arg2: i32, %arg3: memref<32x128xf32, #tpu.memory_space<vmem>>, %arg4: memref<128x384xbf16, #tpu.memory_space<vmem>>, %arg5: memref<1x128xf32, #tpu.memory_space<vmem>>, %arg6: memref<1x128xf32, #tpu.memory_space<vmem>>, %arg7: memref<32x384xbf16, #tpu.memory_space<vmem>>, %arg8: memref<32x384xf32, #tpu.memory_space<vmem>>) attributes {dimension_semantics = [#tpu.dimension_semantics<parallel>, #tpu.dimension_semantics<parallel>, #tpu.dimension_semantics<arbitrary>], iteration_bounds = array<i64: 1, 1, 1>, scalar_prefetch = 0 : i64, scratch_operands = 1 : i64, tpu.core_type = #tpu.core_type<tc>, window_params = [{transform_indices = @transform_0, window_bounds = array<i64: 32, 128>}, {transform_indices = @transform_1, window_bounds = array<i64: 128, 384>}, {pipeline_mode = #tpu.pipeline_mode<synchronous>, transform_indices = @transform_2, window_bounds = array<i64: 1, 128>}, {pipeline_mode = #tpu.pipeline_mode<synchronous>, transform_indices = @transform_3, window_bounds = array<i64: 1, 128>}, {transform_indices = @transform_4, window_bounds = array<i64: 32, 384>}]} {
    %c0_i32 = arith.constant 0 : i32
    %0 = arith.cmpi eq, %arg2, %c0_i32 : i32
    %1 = arith.extui %0 : i1 to i32
    %c0_i32_0 = arith.constant 0 : i32
    %2 = arith.cmpi ne, %1, %c0_i32_0 : i32
    scf.if %2 {
      %cst_19 = arith.constant 0.000000e+00 : f32
      %35 = vector.broadcast %cst_19 : f32 to vector<32x384xf32>
      %c0_20 = arith.constant 0 : index
      %c0_21 = arith.constant 0 : index
      %36 = vector.load %arg8[%c0_20, %c0_21] : memref<32x384xf32, #tpu.memory_space<vmem>>, vector<32x384xf32>
      tpu.vector_store %arg8[%c0_20, %c0_21], %35 {strides = array<i32>} : memref<32x384xf32, #tpu.memory_space<vmem>>, vector<32x384xf32>,
    } else {
    }
    %c0 = arith.constant 0 : index
    %c0_1 = arith.constant 0 : index
    %3 = vector.load %arg3[%c0, %c0_1] : memref<32x128xf32, #tpu.memory_space<vmem>>, vector<32x128xf32>
    %cst = arith.constant dense<0.000000e+00> : vector<32xf32>
    %4 = vector.multi_reduction <add>, %3, %cst [1] : vector<32x128xf32> to vector<32xf32>
    %5 = vector.shape_cast %4 : vector<32xf32> to vector<32x1xf32>
    %cst_2 = arith.constant 1.280000e+02 : f32
    %6 = vector.broadcast %cst_2 : f32 to vector<32x1xf32>
    %7 = arith.divf %5, %6 : vector<32x1xf32>
    %8 = vector.broadcast %7 : vector<32x1xf32> to vector<32x128xf32>
    %9 = arith.subf %3, %8 : vector<32x128xf32>
    %10 = arith.mulf %9, %9 : vector<32x128xf32>
    %cst_3 = arith.constant dense<0.000000e+00> : vector<32xf32>
    %11 = vector.multi_reduction <add>, %10, %cst_3 [1] : vector<32x128xf32> to vector<32xf32>
    %12 = vector.shape_cast %11 : vector<32xf32> to vector<32x1xf32>
    %cst_4 = arith.constant 1.280000e+02 : f32
    %13 = vector.broadcast %cst_4 : f32 to vector<32x1xf32>
    %14 = arith.divf %12, %13 : vector<32x1xf32>
    %cst_5 = arith.constant 9.99999974E-6 : f32
    %15 = vector.broadcast %cst_5 : f32 to vector<32x1xf32>
    %16 = arith.addf %14, %15 : vector<32x1xf32>
    %17 = math.rsqrt %16 : vector<32x1xf32>
    %18 = vector.broadcast %17 : vector<32x1xf32> to vector<32x128xf32>
    %19 = arith.mulf %9, %18 : vector<32x128xf32>
    %c0_6 = arith.constant 0 : index
    %c0_7 = arith.constant 0 : index
    %20 = vector.load %arg5[%c0_6, %c0_7] : memref<1x128xf32, #tpu.memory_space<vmem>>, vector<1x128xf32>
    %21 = vector.broadcast %20 : vector<1x128xf32> to vector<32x128xf32>
    %22 = arith.mulf %19, %21 : vector<32x128xf32>
    %c0_8 = arith.constant 0 : index
    %c0_9 = arith.constant 0 : index
    %23 = vector.load %arg6[%c0_8, %c0_9] : memref<1x128xf32, #tpu.memory_space<vmem>>, vector<1x128xf32>
    %24 = vector.broadcast %23 : vector<1x128xf32> to vector<32x128xf32>
    %25 = arith.addf %22, %24 : vector<32x128xf32>
    %26 = arith.truncf %25 : vector<32x128xf32> to vector<32x128xbf16>
    %c0_10 = arith.constant 0 : index
    %c0_11 = arith.constant 0 : index
    %27 = vector.load %arg8[%c0_10, %c0_11] : memref<32x384xf32, #tpu.memory_space<vmem>>, vector<32x384xf32>
    %c0_12 = arith.constant 0 : index
    %c0_13 = arith.constant 0 : index
    %28 = vector.load %arg4[%c0_12, %c0_13] : memref<128x384xbf16, #tpu.memory_space<vmem>>, vector<128x384xbf16>
    %cst_14 = arith.constant dense<0.000000e+00> : vector<32x384xf32>
    %29 = tpu.matmul %26, %28, %cst_14 {dimension_numbers = #tpu.dot_dimension_numbers<[1], [0], [0], [1], [0, 0, 1, 1], [], []>} : vector<32x128xbf16>, vector<128x384xbf16>, vector<32x384xf32> -> vector<32x384xf32>
    %30 = arith.addf %27, %29 : vector<32x384xf32>
    %c0_15 = arith.constant 0 : index
    %c0_16 = arith.constant 0 : index
    %31 = vector.load %arg8[%c0_15, %c0_16] : memref<32x384xf32, #tpu.memory_space<vmem>>, vector<32x384xf32>
    tpu.vector_store %arg8[%c0_15, %c0_16], %30 {strides = array<i32>} : memref<32x384xf32, #tpu.memory_space<vmem>>, vector<32x384xf32>,
    %c0_i32_17 = arith.constant 0 : i32
    %32 = arith.cmpi eq, %arg2, %c0_i32_17 : i32
    %33 = arith.extui %32 : i1 to i32
    %c0_i32_18 = arith.constant 0 : i32
    %34 = arith.cmpi ne, %33, %c0_i32_18 : i32
    scf.if %34 {
      %c0_19 = arith.constant 0 : index
      %c0_20 = arith.constant 0 : index
      %35 = vector.load %arg8[%c0_19, %c0_20] : memref<32x384xf32, #tpu.memory_space<vmem>>, vector<32x384xf32>
      %36 = arith.truncf %35 : vector<32x384xf32> to vector<32x384xbf16>
      %c0_21 = arith.constant 0 : index
      %c0_22 = arith.constant 0 : index
      %37 = vector.load %arg7[%c0_21, %c0_22] : memref<32x384xbf16, #tpu.memory_space<vmem>>, vector<32x384xbf16>
      tpu.vector_store %arg7[%c0_21, %c0_22], %36 {strides = array<i32>} : memref<32x384xbf16, #tpu.memory_space<vmem>>, vector<32x384xbf16>,
    } else {
    }
    return
  }
  func.func @transform_0(%arg0: i32, %arg1: i32, %arg2: i32) -> (i32, i32) {
    %c0_i32 = arith.constant 0 : i32
    return %arg0, %arg2 : i32, i32
  }
  func.func @transform_1(%arg0: i32, %arg1: i32, %arg2: i32) -> (i32, i32) {
    %c0_i32 = arith.constant 0 : i32
    return %arg2, %arg1 : i32, i32
  }
  func.func @transform_2(%arg0: i32, %arg1: i32, %arg2: i32) -> (i32, i32) {
    %c0_i32 = arith.constant 0 : i32
    %c0_i32_0 = arith.constant 0 : i32
    %c0_i32_1 = arith.constant 0 : i32
    return %c0_i32, %c0_i32_0 : i32, i32
  }
  func.func @transform_3(%arg0: i32, %arg1: i32, %arg2: i32) -> (i32, i32) {
    %c0_i32 = arith.constant 0 : i32
    %c0_i32_0 = arith.constant 0 : i32
    %c0_i32_1 = arith.constant 0 : i32
    return %c0_i32, %c0_i32_0 : i32, i32
  }
  func.func @transform_4(%arg0: i32, %arg1: i32, %arg2: i32) -> (i32, i32) {
    %c0_i32 = arith.constant 0 : i32
    return %arg0, %arg1 : i32, i32
  }
}

module attributes {stable_mosaic.version = 11 : i64} {
  func.func @kernel(%arg0: i32, %arg1: i32, %arg2: i32, %arg3: memref<32x128xbf16, #tpu.memory_space<vmem>>, %arg4: memref<128x128xbf16, #tpu.memory_space<vmem>>, %arg5: memref<1x128xf32, #tpu.memory_space<vmem>>, %arg6: memref<32x128xf32, #tpu.memory_space<vmem>>, %arg7: memref<32x128xf32, #tpu.memory_space<vmem>>, %arg8: memref<32x128xf32, #tpu.memory_space<vmem>>) attributes {dimension_semantics = [#tpu.dimension_semantics<parallel>, #tpu.dimension_semantics<parallel>, #tpu.dimension_semantics<arbitrary>], iteration_bounds = array<i64: 1, 1, 1>, scalar_prefetch = 0 : i64, scratch_operands = 1 : i64, tpu.core_type = #tpu.core_type<tc>, window_params = [{transform_indices = @transform_0, window_bounds = array<i64: 32, 128>}, {transform_indices = @transform_1, window_bounds = array<i64: 128, 128>}, {transform_indices = @transform_2, window_bounds = array<i64: 1, 128>}, {transform_indices = @transform_3, window_bounds = array<i64: 32, 128>}, {transform_indices = @transform_4, window_bounds = array<i64: 32, 128>}]} {
    %c0_i32 = arith.constant 0 : i32
    %0 = arith.cmpi eq, %arg2, %c0_i32 : i32
    %1 = arith.extui %0 : i1 to i32
    %c0_i32_0 = arith.constant 0 : i32
    %2 = arith.cmpi ne, %1, %c0_i32_0 : i32
    scf.if %2 {
      %cst_10 = arith.constant 0.000000e+00 : f32
      %12 = vector.broadcast %cst_10 : f32 to vector<32x128xf32>
      %c0_11 = arith.constant 0 : index
      %c0_12 = arith.constant 0 : index
      %13 = vector.load %arg8[%c0_11, %c0_12] : memref<32x128xf32, #tpu.memory_space<vmem>>, vector<32x128xf32>
      tpu.vector_store %arg8[%c0_11, %c0_12], %12 {strides = array<i32>} : memref<32x128xf32, #tpu.memory_space<vmem>>, vector<32x128xf32>,
    } else {
    }
    %c0 = arith.constant 0 : index
    %c0_1 = arith.constant 0 : index
    %3 = vector.load %arg3[%c0, %c0_1] : memref<32x128xbf16, #tpu.memory_space<vmem>>, vector<32x128xbf16>
    %c0_2 = arith.constant 0 : index
    %c0_3 = arith.constant 0 : index
    %4 = vector.load %arg8[%c0_2, %c0_3] : memref<32x128xf32, #tpu.memory_space<vmem>>, vector<32x128xf32>
    %c0_4 = arith.constant 0 : index
    %c0_5 = arith.constant 0 : index
    %5 = vector.load %arg4[%c0_4, %c0_5] : memref<128x128xbf16, #tpu.memory_space<vmem>>, vector<128x128xbf16>
    %cst = arith.constant dense<0.000000e+00> : vector<32x128xf32>
    %6 = tpu.matmul %3, %5, %cst {dimension_numbers = #tpu.dot_dimension_numbers<[1], [0], [0], [1], [0, 0, 1, 1], [], []>} : vector<32x128xbf16>, vector<128x128xbf16>, vector<32x128xf32> -> vector<32x128xf32>
    %7 = arith.addf %4, %6 : vector<32x128xf32>
    %c0_6 = arith.constant 0 : index
    %c0_7 = arith.constant 0 : index
    %8 = vector.load %arg8[%c0_6, %c0_7] : memref<32x128xf32, #tpu.memory_space<vmem>>, vector<32x128xf32>
    tpu.vector_store %arg8[%c0_6, %c0_7], %7 {strides = array<i32>} : memref<32x128xf32, #tpu.memory_space<vmem>>, vector<32x128xf32>,
    %c0_i32_8 = arith.constant 0 : i32
    %9 = arith.cmpi eq, %arg2, %c0_i32_8 : i32
    %10 = arith.extui %9 : i1 to i32
    %c0_i32_9 = arith.constant 0 : i32
    %11 = arith.cmpi ne, %10, %c0_i32_9 : i32
    scf.if %11 {
      %c0_10 = arith.constant 0 : index
      %c0_11 = arith.constant 0 : index
      %12 = vector.load %arg8[%c0_10, %c0_11] : memref<32x128xf32, #tpu.memory_space<vmem>>, vector<32x128xf32>
      %c0_12 = arith.constant 0 : index
      %c0_13 = arith.constant 0 : index
      %13 = vector.load %arg5[%c0_12, %c0_13] : memref<1x128xf32, #tpu.memory_space<vmem>>, vector<1x128xf32>
      %14 = vector.broadcast %13 : vector<1x128xf32> to vector<32x128xf32>
      %15 = arith.addf %12, %14 : vector<32x128xf32>
      %c0_14 = arith.constant 0 : index
      %c0_15 = arith.constant 0 : index
      %16 = vector.load %arg6[%c0_14, %c0_15] : memref<32x128xf32, #tpu.memory_space<vmem>>, vector<32x128xf32>
      %17 = arith.addf %15, %16 : vector<32x128xf32>
      %c0_16 = arith.constant 0 : index
      %c0_17 = arith.constant 0 : index
      %18 = vector.load %arg7[%c0_16, %c0_17] : memref<32x128xf32, #tpu.memory_space<vmem>>, vector<32x128xf32>
      tpu.vector_store %arg7[%c0_16, %c0_17], %17 {strides = array<i32>} : memref<32x128xf32, #tpu.memory_space<vmem>>, vector<32x128xf32>,
    } else {
    }
    return
  }
  func.func @transform_0(%arg0: i32, %arg1: i32, %arg2: i32) -> (i32, i32) {
    %c0_i32 = arith.constant 0 : i32
    return %arg0, %arg2 : i32, i32
  }
  func.func @transform_1(%arg0: i32, %arg1: i32, %arg2: i32) -> (i32, i32) {
    %c0_i32 = arith.constant 0 : i32
    return %arg2, %arg1 : i32, i32
  }
  func.func @transform_2(%arg0: i32, %arg1: i32, %arg2: i32) -> (i32, i32) {
    %c0_i32 = arith.constant 0 : i32
    %c0_i32_0 = arith.constant 0 : i32
    return %c0_i32, %arg1 : i32, i32
  }
  func.func @transform_3(%arg0: i32, %arg1: i32, %arg2: i32) -> (i32, i32) {
    %c0_i32 = arith.constant 0 : i32
    return %arg0, %arg1 : i32, i32
  }
  func.func @transform_4(%arg0: i32, %arg1: i32, %arg2: i32) -> (i32, i32) {
    %c0_i32 = arith.constant 0 : i32
    return %arg0, %arg1 : i32, i32
  }
}

module attributes {stable_mosaic.version = 11 : i64} {
  func.func @kernel(%arg0: i32, %arg1: i32, %arg2: i32, %arg3: memref<32x512xbf16, #tpu.memory_space<vmem>>, %arg4: memref<512x128xbf16, #tpu.memory_space<vmem>>, %arg5: memref<1x128xf32, #tpu.memory_space<vmem>>, %arg6: memref<32x128xf32, #tpu.memory_space<vmem>>, %arg7: memref<32x128xf32, #tpu.memory_space<vmem>>, %arg8: memref<32x128xf32, #tpu.memory_space<vmem>>) attributes {dimension_semantics = [#tpu.dimension_semantics<parallel>, #tpu.dimension_semantics<parallel>, #tpu.dimension_semantics<arbitrary>], iteration_bounds = array<i64: 1, 1, 1>, scalar_prefetch = 0 : i64, scratch_operands = 1 : i64, tpu.core_type = #tpu.core_type<tc>, window_params = [{transform_indices = @transform_0, window_bounds = array<i64: 32, 512>}, {transform_indices = @transform_1, window_bounds = array<i64: 512, 128>}, {transform_indices = @transform_2, window_bounds = array<i64: 1, 128>}, {transform_indices = @transform_3, window_bounds = array<i64: 32, 128>}, {transform_indices = @transform_4, window_bounds = array<i64: 32, 128>}]} {
    %c0_i32 = arith.constant 0 : i32
    %0 = arith.cmpi eq, %arg2, %c0_i32 : i32
    %1 = arith.extui %0 : i1 to i32
    %c0_i32_0 = arith.constant 0 : i32
    %2 = arith.cmpi ne, %1, %c0_i32_0 : i32
    scf.if %2 {
      %cst_10 = arith.constant 0.000000e+00 : f32
      %12 = vector.broadcast %cst_10 : f32 to vector<32x128xf32>
      %c0_11 = arith.constant 0 : index
      %c0_12 = arith.constant 0 : index
      %13 = vector.load %arg8[%c0_11, %c0_12] : memref<32x128xf32, #tpu.memory_space<vmem>>, vector<32x128xf32>
      tpu.vector_store %arg8[%c0_11, %c0_12], %12 {strides = array<i32>} : memref<32x128xf32, #tpu.memory_space<vmem>>, vector<32x128xf32>,
    } else {
    }
    %c0 = arith.constant 0 : index
    %c0_1 = arith.constant 0 : index
    %3 = vector.load %arg3[%c0, %c0_1] : memref<32x512xbf16, #tpu.memory_space<vmem>>, vector<32x512xbf16>
    %c0_2 = arith.constant 0 : index
    %c0_3 = arith.constant 0 : index
    %4 = vector.load %arg8[%c0_2, %c0_3] : memref<32x128xf32, #tpu.memory_space<vmem>>, vector<32x128xf32>
    %c0_4 = arith.constant 0 : index
    %c0_5 = arith.constant 0 : index
    %5 = vector.load %arg4[%c0_4, %c0_5] : memref<512x128xbf16, #tpu.memory_space<vmem>>, vector<512x128xbf16>
    %cst = arith.constant dense<0.000000e+00> : vector<32x128xf32>
    %6 = tpu.matmul %3, %5, %cst {dimension_numbers = #tpu.dot_dimension_numbers<[1], [0], [0], [1], [0, 0, 1, 1], [], []>} : vector<32x512xbf16>, vector<512x128xbf16>, vector<32x128xf32> -> vector<32x128xf32>
    %7 = arith.addf %4, %6 : vector<32x128xf32>
    %c0_6 = arith.constant 0 : index
    %c0_7 = arith.constant 0 : index
    %8 = vector.load %arg8[%c0_6, %c0_7] : memref<32x128xf32, #tpu.memory_space<vmem>>, vector<32x128xf32>
    tpu.vector_store %arg8[%c0_6, %c0_7], %7 {strides = array<i32>} : memref<32x128xf32, #tpu.memory_space<vmem>>, vector<32x128xf32>,
    %c0_i32_8 = arith.constant 0 : i32
    %9 = arith.cmpi eq, %arg2, %c0_i32_8 : i32
    %10 = arith.extui %9 : i1 to i32
    %c0_i32_9 = arith.constant 0 : i32
    %11 = arith.cmpi ne, %10, %c0_i32_9 : i32
    scf.if %11 {
      %c0_10 = arith.constant 0 : index
      %c0_11 = arith.constant 0 : index
      %12 = vector.load %arg8[%c0_10, %c0_11] : memref<32x128xf32, #tpu.memory_space<vmem>>, vector<32x128xf32>
      %c0_12 = arith.constant 0 : index
      %c0_13 = arith.constant 0 : index
      %13 = vector.load %arg5[%c0_12, %c0_13] : memref<1x128xf32, #tpu.memory_space<vmem>>, vector<1x128xf32>
      %14 = vector.broadcast %13 : vector<1x128xf32> to vector<32x128xf32>
      %15 = arith.addf %12, %14 : vector<32x128xf32>
      %c0_14 = arith.constant 0 : index
      %c0_15 = arith.constant 0 : index
      %16 = vector.load %arg6[%c0_14, %c0_15] : memref<32x128xf32, #tpu.memory_space<vmem>>, vector<32x128xf32>
      %17 = arith.addf %15, %16 : vector<32x128xf32>
      %c0_16 = arith.constant 0 : index
      %c0_17 = arith.constant 0 : index
      %18 = vector.load %arg7[%c0_16, %c0_17] : memref<32x128xf32, #tpu.memory_space<vmem>>, vector<32x128xf32>
      tpu.vector_store %arg7[%c0_16, %c0_17], %17 {strides = array<i32>} : memref<32x128xf32, #tpu.memory_space<vmem>>, vector<32x128xf32>,
    } else {
    }
    return
  }
  func.func @transform_0(%arg0: i32, %arg1: i32, %arg2: i32) -> (i32, i32) {
    %c0_i32 = arith.constant 0 : i32
    return %arg0, %arg2 : i32, i32
  }
  func.func @transform_1(%arg0: i32, %arg1: i32, %arg2: i32) -> (i32, i32) {
    %c0_i32 = arith.constant 0 : i32
    return %arg2, %arg1 : i32, i32
  }
  func.func @transform_2(%arg0: i32, %arg1: i32, %arg2: i32) -> (i32, i32) {
    %c0_i32 = arith.constant 0 : i32
    %c0_i32_0 = arith.constant 0 : i32
    return %c0_i32, %arg1 : i32, i32
  }
  func.func @transform_3(%arg0: i32, %arg1: i32, %arg2: i32) -> (i32, i32) {
    %c0_i32 = arith.constant 0 : i32
    return %arg0, %arg1 : i32, i32
  }
  func.func @transform_4(%arg0: i32, %arg1: i32, %arg2: i32) -> (i32, i32) {
    %c0_i32 = arith.constant 0 : i32
    return %arg0, %arg1 : i32, i32
  }
}

</mosaic_0001>

<bundles_post_ra>
// kernel: block_forward.5
= control target key start
LH: loop header
LB: loop body
LE: loop exit
PB: predicated region body
PF: predicated region fallthrough
CT: control target
= control target key end

     0   :  { %9 = vsyncpa [#allocation4], 0  ;;  %s775_s0 = inlined_call_operand.hbm [shape: f32[32,128], index: 0, kind: input, shape index: {}]   ;;  %s776_s1 = inlined_call_operand.hbm [shape: bf16[128,384], index: 1, kind: input, shape index: {}]   ;;  %s777_s2 = inlined_call_operand.vmem [shape: f32[1,128], index: 2, kind: input, shape index: {}]   ;;  %s778_s3 = inlined_call_operand.vmem [shape: f32[1,128], index: 3, kind: input, shape index: {}]   ;;  %s779_s4 = inlined_call_operand.vmem [shape: bf16[32,384], index: 4, kind: output, shape index: {}]  }
   0x1   :  { %10 = vsyncpa [#allocation6], 0  ;;  %s669_s15 = smov [#allocation3]   ;;  %s621_s19 = scalar_lea.hbm %s775_s0, 512 }
   0x2   :  { %s16_s16 = sshll.u32 %s669_s15, 4  ;;  %p622_p0 = scmp.ne.s32.totalorder %s775_s0, %s621_s19  ;;  %s17_s16 = int_to_ptr.vmem [resolvable:$true] %s16_s16 }
   0x3   :  { %p625_p1 = scmp.lt.u32.totalorder %s621_s19, %s775_s0 }
   0x5   :  { %p627_p2 = pnand %p625_p1, %p622_p0 }
   0x7   :  { %630 = shalt.err (!%p627_p2)
}
   0x8   :  { %s631_s24 = scalar_lea.vmem %s17_s16, 512  ;;  %p636_p4 = scmp.lt.s32.totalorder %s17_s16, %s17_s16 }
   0x9   :  { %p632_p3 = scmp.ne.s32.totalorder %s17_s16, %s631_s24  ;;  %p637_p5 = scmp.lt.s32.totalorder %s631_s24, %s631_s24 }
   0xb   :  { %p638_p6 = por %p637_p5, %p636_p4 }
   0xd   :  { %p639_p7 = pnand %p638_p6, %p632_p3 }
   0xf   :  { %642 = shalt.err (!%p639_p7)
}
  0x10   :  { %s670_s25 = smov 128   ;;  %s671_s26 = smov 8  }
  0x11   :  { %22 = dma.hbm_to_vmem [thread:$0]  %s775_s0, 512, %s17_s16, [#allocation4], %s670_s25, %s670_s25, %s671_s26  }
  0x12   :  { %s672_s29 = smov [#allocation5]   ;;  %s643_s7 = scalar_lea.hbm %s776_s1, 3072 }
  0x13   :  { %s28_s30 = sshll.u32 %s672_s29, 4  ;;  %p644_p8 = scmp.ne.s32.totalorder %s776_s1, %s643_s7  ;;  %s29_s30 = int_to_ptr.vmem [resolvable:$true] %s28_s30 }
  0x14   :  { %p647_p9 = scmp.lt.u32.totalorder %s643_s7, %s776_s1 }
  0x16   :  { %p649_p10 = pnand %p647_p9, %p644_p8 }
  0x18   :  { %652 = shalt.err (!%p649_p10)
}
  0x19   :  { %s653_s12 = scalar_lea.vmem %s29_s30, 3072  ;;  %p658_p12 = scmp.lt.s32.totalorder %s29_s30, %s29_s30 }
  0x1a   :  { %p654_p11 = scmp.ne.s32.totalorder %s29_s30, %s653_s12  ;;  %p659_p13 = scmp.lt.s32.totalorder %s653_s12, %s653_s12 }
  0x1c   :  { %p660_p0 = por %p659_p13, %p658_p12 }
  0x1e   :  { %p661_p1 = pnand %p660_p0, %p654_p11 }
  0x20   :  { %664 = shalt.err (!%p661_p1)
}
  0x21   :  { %s673_s0 = smov 192   ;;  %s674_s13 = smov 12  }
  0x22   :  { %34 = dma.hbm_to_vmem [thread:$0]  %s776_s1, 3072, %s29_s30, [#allocation6], %s673_s0, %s673_s0, %s674_s13  }
  0x23   :  { %665 = dma.done.wait [#allocation4], 512  }
  0x24   :  { %666 = vsyncadd [#allocation4], 4294966784 }
  0x25   :  { %667 = dma.done.wait [#allocation6], 3072  }
  0x26   :  { %668 = vsyncadd [#allocation6], 4294964224  ;;  %v62_v0 = vld [vmem:[#allocation3] sm:$0xff]  ;;  %v64_v1 = vld [vmem:[#allocation3 + $0x10] sm:$0xff]  ;;  %v675_v39 = vmov 0  }
  0x27   :  { %v63_v2 = vld [vmem:[#allocation3 + $0x8] sm:$0xff]  ;;  %66 = vadd.xlane.f32.xlu0 %v62_v0  ;;  %70 = vadd.xlane.f32.xlu1 %v64_v1  ;;  %v65_v3 = vld [vmem:[#allocation3 + $0x18] sm:$0xff]  ;;  %v581_v4 = vld [vmem:[#allocation5 + $0x4] ss:$12 sps:$4 sm:$0xff]  }
  0x28   :  { %v583_v5 = vld [vmem:[#allocation5] ss:$12 sps:$4 sm:$0xff]   ;;  %v584_v6 = vld [vmem:[#allocation5 + $0x1c] ss:$12 sps:$4 sm:$0xff]   ;;  %307 = vmatprep.subr.bf16.mxu0 %v581_v4  ;;  %v587_v24 = vld [vmem:[#allocation5 + $0x18] ss:$12 sps:$4 sm:$0xff]   ;;  %339 = vmatprep.mubr.bf16.mxu0 %v675_v39 }
  0x29   :  { %v586_v7 = vld [vmem:[#allocation5 + $0x8] ss:$12 sps:$4 sm:$0xff]   ;;  %308 = vmatpush1.bf16.msra.mxu0 %v583_v5  ;;  %v590_v26 = vld [vmem:[#allocation5 + $0x20] ss:$12 sps:$4 sm:$0xff]   ;;  %v591_v27 = vld [vmem:[#allocation5 + $0x30] ss:$12 sps:$4 sm:$0xff]  }
  0x2a   :  { %554 = vmatprep.subr.bf16.mxu1 %v586_v7  ;;  %309 = vmatprep.subr.bf16.mxu0 %v584_v6  ;;  %v588_v25 = vld [vmem:[#allocation5 + $0x34] ss:$12 sps:$4 sm:$0xff]   ;;  %v592_v28 = vld [vmem:[#allocation5 + $0x4c] ss:$12 sps:$4 sm:$0xff]   ;;  %v596_v31 = vld [vmem:[#allocation5 + $0x64] ss:$12 sps:$4 sm:$0xff]  }
  0x2b   :  { %68 = vadd.xlane.f32.xlu0 %v63_v2  ;;  %72 = vadd.xlane.f32.xlu1 %v65_v3  ;;  %v594_v29 = vld [vmem:[#allocation5 + $0x38] ss:$12 sps:$4 sm:$0xff]   ;;  %v595_v30 = vld [vmem:[#allocation5 + $0x48] ss:$12 sps:$4 sm:$0xff]   ;;  %v598_v32 = vld [vmem:[#allocation5 + $0x50] ss:$12 sps:$4 sm:$0xff]  }
  0x2c   :  { %555 = vmatpush3.bf16.msra.mxu1 %v586_v7  ;;  %v599_v33 = vld [vmem:[#allocation5 + $0x60] ss:$12 sps:$4 sm:$0xff]   ;;  %v600_v34 = vld [vmem:[#allocation5 + $0x7c] ss:$12 sps:$4 sm:$0xff]   ;;  %v603_v36 = vld [vmem:[#allocation5 + $0x78] ss:$12 sps:$4 sm:$0xff]  }
  0x2d   :  { %310 = vmatpush1.bf16.msra.mxu0 %v587_v24  ;;  %556 = vmatprep.subr.bf16.mxu1 %v590_v26  ;;  %v602_v35 = vld [vmem:[#allocation5 + $0x68] ss:$12 sps:$4 sm:$0xff]   ;;  %v606_v38 = vld [vmem:[#allocation5 + $0x80] ss:$12 sps:$4 sm:$0xff]   ;;  %v607_v40 = vld [vmem:[#allocation5 + $0x90] ss:$12 sps:$4 sm:$0xff]  }
  0x2e   :  { %311 = vmatprep.subr.bf16.mxu0 %v588_v25  ;;  %v604_v37 = vld [vmem:[#allocation5 + $0x94] ss:$12 sps:$4 sm:$0xff]   ;;  %v608_v41 = vld [vmem:[#allocation5 + $0xac] ss:$12 sps:$4 sm:$0xff]   ;;  %v612_v44 = vld [vmem:[#allocation5 + $0xb0] ss:$12 sps:$4 sm:$0xff]  }
  0x2f   :  { %v610_v42 = vld [vmem:[#allocation5 + $0x98] ss:$12 sps:$4 sm:$0xff]   ;;  %v611_v43 = vld [vmem:[#allocation5 + $0xa8] ss:$12 sps:$4 sm:$0xff]   ;;  %v502_v59 = vld [vmem:[%s777_s2] ss:$0 sm:$0xff] }
  0x30   :  { %557 = vmatpush3.bf16.msra.mxu1 %v590_v26 }
  0x31   :  { %312 = vmatpush1.bf16.msra.mxu0 %v591_v27  ;;  %558 = vmatprep.subr.bf16.mxu1 %v594_v29 }
  0x32   :  { %313 = vmatprep.subr.bf16.mxu0 %v592_v28 }
  0x34   :  { %559 = vmatpush3.bf16.msra.mxu1 %v594_v29 }
  0x35   :  { %314 = vmatpush1.bf16.msra.mxu0 %v595_v30  ;;  %560 = vmatprep.subr.bf16.mxu1 %v598_v32 }
  0x36   :  { %315 = vmatprep.subr.bf16.mxu0 %v596_v31 }
  0x38   :  { %561 = vmatpush3.bf16.msra.mxu1 %v598_v32 }
  0x39   :  { %316 = vmatpush1.bf16.msra.mxu0 %v599_v33  ;;  %562 = vmatprep.subr.bf16.mxu1 %v602_v35 }
  0x3a   :  { %317 = vmatprep.subr.bf16.mxu0 %v600_v34 }
  0x3c   :  { %563 = vmatpush3.bf16.msra.mxu1 %v602_v35 }
  0x3d   :  { %318 = vmatpush1.bf16.msra.mxu0 %v603_v36  ;;  %564 = vmatprep.subr.bf16.mxu1 %v606_v38 }
  0x3e   :  { %319 = vmatprep.subr.bf16.mxu0 %v604_v37 }
  0x40   :  { %565 = vmatpush3.bf16.msra.mxu1 %v606_v38 }
  0x41   :  { %320 = vmatpush1.bf16.msra.mxu0 %v607_v40  ;;  %566 = vmatprep.subr.bf16.mxu1 %v610_v42 }
  0x42   :  { %321 = vmatprep.subr.bf16.mxu0 %v608_v41 }
  0x44   :  { %567 = vmatpush3.bf16.msra.mxu1 %v610_v42 }
  0x45   :  { %322 = vmatpush1.bf16.msra.mxu0 %v611_v43  ;;  %568 = vmatprep.subr.bf16.mxu1 %v612_v44 }
  0x48   :  { %569 = vmatpush3.bf16.msra.mxu1 %v612_v44 }
  0xb4   :  { %v67_v8 = vpop.xlane.xlu0 %66  ;;  %v71_v9 = vpop.xlane.xlu1 %70 }
  0xb5   :  { %v75_v10 = vmul.f32 0.0078125, %v67_v8  ;;  %v77_v11 = vmul.f32 0.0078125, %v71_v9 }
  0xb7   :  { %v725_v12 = vsub.f32 %v62_v0, %v75_v10  ;;  %v727_v13 = vsub.f32 %v64_v1, %v77_v11  ;;  %v503_v0 = vld [vmem:[%s778_s3] ss:$0 sm:$0xff] }
  0xb8   :  { %v69_v14 = vpop.xlane.xlu0 %68  ;;  %v73_v15 = vpop.xlane.xlu1 %72 }
  0xb9   :  { %v76_v16 = vmul.f32 0.0078125, %v69_v14  ;;  %v83_v17 = vmul.f32 %v725_v12, %v725_v12  ;;  %v78_v18 = vmul.f32 0.0078125, %v73_v15  ;;  %v85_v21 = vmul.f32 %v727_v13, %v727_v13 }
  0xbb   :  { %v731_v19 = vsub.f32 %v63_v2, %v76_v16  ;;  %87 = vadd.xlane.f32.xlu0 %v83_v17  ;;  %v733_v20 = vsub.f32 %v65_v3, %v78_v18 }
  0xbd   :  { %v84_v22 = vmul.f32 %v731_v19, %v731_v19  ;;  %v86_v23 = vmul.f32 %v733_v20, %v733_v20 }
  0xbf   :  { %91 = vadd.xlane.f32.xlu0 %v85_v21  ;;  %89 = vadd.xlane.f32.xlu1 %v84_v22 }
  0xc3   :  { %93 = vadd.xlane.f32.xlu1 %v86_v23 }
 0x148   :  { %v88_v45 = vpop.xlane.xlu0 %87 }
 0x149   :  { %v95_v46 = vmul.f32 0.0078125, %v88_v45 }
 0x14b   :  { %v99_v47 = vadd.f32 1e-05, %v95_v46 }
 0x14c   :  { %v90_v48 = vpop.xlane.xlu1 %89  ;;  %v92_v49 = vpop.xlane.xlu0 %91 }
 0x14d   :  { %613 = vrsqrt.f32 %v99_v47  ;;  %v96_v50 = vmul.f32 0.0078125, %v90_v48  ;;  %v97_v51 = vmul.f32 0.0078125, %v92_v49 }
 0x14f   :  { %v100_v52 = vadd.f32 1e-05, %v96_v50  ;;  %v101_v53 = vadd.f32 1e-05, %v97_v51 }
 0x150   :  { %v94_v54 = vpop.xlane.xlu1 %93 }
 0x151   :  { %615 = vrsqrt.f32 %v100_v52  ;;  %v98_v55 = vmul.f32 0.0078125, %v94_v54 }
 0x152   :  { %617 = vrsqrt.f32 %v101_v53 }
 0x153   :  { %v102_v56 = vadd.f32 1e-05, %v98_v55 }
 0x155   :  { %619 = vrsqrt.f32 %v102_v56 }
 0x157   :  { %v614_v57 = vpop.eup %613 }
 0x158   :  { %v107_v58 = vmul.f32 %v614_v57, %v725_v12 }
 0x15a   :  { %v118_v63 = vmul.f32 %v502_v59, %v107_v58 }
 0x15b   :  { %v616_v60 = vpop.eup %615 }
 0x15c   :  { %v618_v61 = vpop.eup %617  ;;  %v108_v62 = vmul.f32 %v616_v60, %v731_v19  ;;  %v129_v4 = vadd.f32 %v503_v0, %v118_v63 }
 0x15d   :  { %v109_v1 = vmul.f32 %v618_v61, %v727_v13 }
 0x15e   :  { %v119_v2 = vmul.f32 %v502_v59, %v108_v62 }
 0x15f   :  { %v620_v3 = vpop.eup %619  ;;  %v120_v7 = vmul.f32 %v502_v59, %v109_v1 }
 0x160   :  { %v130_v5 = vadd.f32 %v503_v0, %v119_v2  ;;  %v110_v6 = vmul.f32 %v620_v3, %v733_v20 }
 0x161   :  { %v131_v10 = vadd.f32 %v503_v0, %v120_v7 }
 0x162   :  { %v133_v8 = vpack.c.bf16 %v130_v5, %v129_v4  ;;  %v121_v9 = vmul.f32 %v502_v59, %v110_v6 }
 0x164   :  { %340 = vmatmul.mubr.bf16.vlgmr.msra.gmra.mrb[0].mxu0 %v133_v8  ;;  %570 = vmatprep.mubr.bf16.mxu1 %v133_v8  ;;  %v132_v11 = vadd.f32 %v503_v0, %v121_v9 }
 0x165   :  { %349 = vmatprep.mubr.bf16.mxu0 %v675_v39 }
 0x166   :  { %v134_v12 = vpack.c.bf16 %v132_v11, %v131_v10 }
 0x168   :  { %571 = vmatmul.mubr.bf16.vlgmr.msra.gmra.mrb[0].mxu1 %v134_v12 }
 0x16c   :  { %350 = vmatmul.mubr.bf16.gmra.mrb[4].mxu0 %v134_v12 }
 0x237   :  { %v341_v14 = vpop.f32.mrb[0].mxu0 }
 0x238   :  { %v343_v15 = vpop.f32.mrb[1].mxu0 }
 0x239   :  { %v536_v13 = vpack.c.bf16 %v343_v15, %v341_v14  ;;  %v345_v16 = vpop.f32.mrb[2].mxu0 }
 0x23a   :  { %v347_v17 = vpop.f32.mrb[3].mxu0 }
 0x23b   :  { %488 = vst [vmem:[%s779_s4] sm:$0xff] %v536_v13  ;;  %v538_v18 = vpack.c.bf16 %v347_v17, %v345_v16  ;;  %v572_v19 = vpop.f32.mrb[0].mxu1 }
 0x23c   :  { %v541_v20 = vpack.c.bf16 %v572_v19, %v572_v19  ;;  %v394_v21 = vpop.f32.mrb[1].mxu1 }
 0x23d   :  { %490 = vst [vmem:[%s779_s4 + $0xc] sm:$0xff] %v538_v18  ;;  %v537_v22 = vpack.c.bf16 %v394_v21, %v394_v21  ;;  %v573_v23 = vpop.f32.mrb[2].mxu1 }
 0x23e   :  { %493 = vst [vmem:[%s779_s4 + $0x20] sm:$0xf] %v541_v20  ;;  %v543_v24 = vpack.c.bf16 %v573_v23, %v573_v23  ;;  %v397_v25 = vpop.f32.mrb[3].mxu1 }
 0x23f   :  { %489 = vst [vmem:[%s779_s4 + $0x8] sm:$0xf] %v537_v22  ;;  %v539_v26 = vpack.c.bf16 %v397_v25, %v397_v25  ;;  %v351_v27 = vpop.f32.mrb[4].mxu0 }
 0x240   :  { %495 = vst [vmem:[%s779_s4 + $0x2c] sm:$0xf] %v543_v24  ;;  %v353_v28 = vpop.f32.mrb[5].mxu0 }
 0x241   :  { %491 = vst [vmem:[%s779_s4 + $0x14] sm:$0xf] %v539_v26  ;;  %v540_v29 = vpack.c.bf16 %v353_v28, %v351_v27  ;;  %v355_v30 = vpop.f32.mrb[6].mxu0 }
 0x242   :  { %v357_v31 = vpop.f32.mrb[7].mxu0 }
 0x243   :  { %492 = vst [vmem:[%s779_s4 + $0x18] sm:$0xff] %v540_v29  ;;  %v542_v32 = vpack.c.bf16 %v357_v31, %v355_v30 }
 0x245   :  { %494 = vst [vmem:[%s779_s4 + $0x24] sm:$0xff] %v542_v32 }
 0x246   :  { %500 = vsyncpa [#allocation4], 1 }
 0x247   :  { %501 = vsyncpa [#allocation6], 1 }

// kernel: block_forward.6
= control target key start
LH: loop header
LB: loop body
LE: loop exit
PB: predicated region body
PF: predicated region fallthrough
CT: control target
= control target key end

     0   :  { %s1023_s12 = smov 0   ;;  %s1025_s13 = smov 0   ;;  %s1132_s0 = inlined_call_operand.vmem [shape: bf16[2,16,384], index: 0, kind: input, shape index: {}, may-alias: {0,1,2}]   ;;  %s1133_s1 = inlined_call_operand.vmem [shape: bf16[2,16,384], index: 1, kind: input, shape index: {}, may-alias: {0,1,2}]   ;;  %s1134_s2 = inlined_call_operand.vmem [shape: bf16[2,16,384], index: 2, kind: input, shape index: {}, may-alias: {0,1,2}]   ;;  %s1135_s3 = inlined_call_operand.vmem [shape: bf16[2,16,128], index: 3, kind: output, shape index: {}]  }
   0x1   :  { %s1027_s14 = smov 0   ;;  %s1029_s15 = smov 0  }
   0x2   :  { %s1031_s16 = smov 0  }
   0x3 LB: > { %s28_s17 = sadd.s32 1, %s994_s15  ;;  %p50_p1 = scmp.ne.s32.totalorder %s986_s13, %s982_s12  ;;  %s998_s16 = sphi %s1031_s16, %s13_s16   ;;  %s994_s15 = sphi %s1029_s15, %s1140_s15   ;;  %s990_s14 = sphi %s1027_s14, %s1139_s14   ;;  %s986_s13 = sphi %s1025_s13, %s1138_s13   ;;  %s982_s12 = sphi %s1023_s12, %s1137_s12  }
   0x4   : > { %p30_p0 = scmp.ge.s32.totalorder %s28_s17, 2  ;;  %p51_p2 = scmp.eq.s32.totalorder %s998_s16, 0 }
   0x5   : > { %s43_s20 = sadd.s32 1, %s986_s13  ;;  %p836_p5 = scmp.ge.s32.totalorder %s998_s16, 2 }
   0x6   : > { %s1142_s17 = smov (%p30_p0, %s28_s17), 0  ;;  %p1054_p3 = por %p51_p2, %p50_p1 }
   0x7   : > { %s36_s19 = ssub.s32 %s994_s15, %s1142_s17  ;;  %166 = sbr.rel (%p836_p5) target bundleno = 35 (0x23), region = 16 }
   0x8   : > { %p41_p4 = scmp.eq.s32.totalorder %s36_s19, 0 }
   0xa   : > { %s1062_s21 = scalar_select %p41_p4, %s986_s13, %s43_s20  }
   0xe   : > { %169 = sbr.rel (!%p1054_p3) target bundleno = 21 (0x15), region = 20  ;;  %s171_s22 = sand.u32 (%p1054_p3), 1, %s986_s13  }
   0xf   : > { %s897_s23 = smul.u32 (%p1054_p3), 24, %s994_s15  ;;  %s837_s24 = sshll.u32 (%p1054_p3), %s171_s22, 3 }
  0x10   : > { %s173_s28 = scalar_lea.vmem (%p1054_p3), [#allocation2], %s837_s24 }
  0x11   : > { %s180_s27 = scalar_lea.vmem (%p1054_p3), %s1132_s0, %s897_s23 }
  0x12   : > { %v196_v0 = vld [vmem:[%s180_s27] sm:$0xf] (%p1054_p3)  ;;  %v198_v1 = vld [vmem:[%s180_s27 + $0xc] sm:$0xf] (%p1054_p3) }
  0x13   : > { %197 = vst [vmem:[%s173_s28] sm:$0xf] (%p1054_p3), %v196_v0  ;;  %199 = vst [vmem:[%s173_s28 + $0x4] sm:$0xf] (%p1054_p3), %v198_v1 }
  0x15 PF: > { %226 = sbr.rel (!%p1054_p3) target bundleno = 28 (0x1c), region = 61  ;;  %s228_s29 = sand.u32 (%p1054_p3), 1, %s986_s13  }
  0x16   : > { %s840_s30 = smul.u32 (%p1054_p3), 24, %s994_s15  ;;  %s839_s4 = sshll.u32 (%p1054_p3), %s228_s29, 3 }
  0x17   : > { %s230_s8 = scalar_lea.vmem (%p1054_p3), [#allocation3], %s839_s4 }
  0x18   : > { %s736_s7 = scalar_lea.vmem (%p1054_p3), %s1133_s1, %s840_s30 }
  0x19   : > { %v841_v2 = vld [vmem:[%s736_s7 + $0x4] sm:$0xf] (%p1054_p3)  ;;  %v842_v3 = vld [vmem:[%s736_s7 + $0x10] sm:$0xf] (%p1054_p3) }
  0x1a   : > { %252 = vst [vmem:[%s230_s8] sm:$0xf] (%p1054_p3), %v841_v2  ;;  %254 = vst [vmem:[%s230_s8 + $0x4] sm:$0xf] (%p1054_p3), %v842_v3 }
  0x1c PF: > { %281 = sbr.rel (!%p1054_p3) target bundleno = 35 (0x23), region = 102  ;;  %s283_s9 = sand.u32 (%p1054_p3), 1, %s986_s13  }
  0x1d   : > { %s844_s10 = smul.u32 (%p1054_p3), 24, %s994_s15  ;;  %s843_s11 = sshll.u32 (%p1054_p3), %s283_s9, 3 }
  0x1e   : > { %s285_s23 = scalar_lea.vmem (%p1054_p3), [#allocation4], %s843_s11 }
  0x1f   : > { %s743_s22 = scalar_lea.vmem (%p1054_p3), %s1134_s2, %s844_s10 }
  0x20   : > { %v845_v4 = vld [vmem:[%s743_s22 + $0x8] sm:$0xf] (%p1054_p3)  ;;  %v846_v5 = vld [vmem:[%s743_s22 + $0x14] sm:$0xf] (%p1054_p3) }
  0x21   : > { %307 = vst [vmem:[%s285_s23] sm:$0xf] (%p1054_p3), %v845_v4  ;;  %309 = vst [vmem:[%s285_s23 + $0x4] sm:$0xf] (%p1054_p3), %v846_v5 }
  0x23 PF: > { %p847_p6 = scmp.ge.s32.totalorder %s998_s16, 1  ;;  %p335_p7 = scmp.lt.s32.totalorder %s998_s16, 3 }
  0x25   : > { %p336_p8 = pnand %p847_p6, %p335_p7 }
  0x26   : > { %s342_s18 = sand.u32 (!%p336_p8), 1, %s982_s12   ;;  %v1000_v6 = vmov (!%p336_p8), 0.0   ;;  %vm1001_vm0 = vmmov (!%p336_p8), 0   ;;  %vm425_vm1 = vcmask (!%p336_p8), 523264   ;;  %s1002_s12 = smov (!%p336_p8), 64   ;;  %vm473_vm2 = vcmask (!%p336_p8), 130048  }
  0x27   : > { %339 = sbr.rel (%p336_p8) target bundleno = 1145 (0x479), region = 143  ;;  %873 = vmatprep.subr.bf16.mxu0 (!%p336_p8), %v1000_v6  ;;  %s848_s24 = sshll.u32 (!%p336_p8), %s342_s18, 3  ;;  %875 = vmatprep.mubr.msk.bf16.mxu0 (!%p336_p8), %vm1001_vm0, %v1000_v6 }
  0x28   : > { %879 = vmatprep.subr.bf16.mxu1 (!%p336_p8), %v1000_v6  ;;  %881 = vmatprep.mubr.msk.bf16.mxu1 (!%p336_p8), %vm1001_vm0, %v1000_v6  ;;  %s351_s25 = scalar_lea.vmem (!%p336_p8), [#allocation3], %s848_s24  ;;  %s344_s26 = scalar_lea.vmem (!%p336_p8), [#allocation2], %s848_s24 }
  0x29   : > { %v941_v7 = vld [vmem:[%s351_s25] sm:$0xff] (!%p336_p8)   ;;  %v942_v9 = vld [vmem:[%s344_s26] sm:$0xff] (!%p336_p8)   ;;  %s358_s27 = scalar_lea.vmem (!%p336_p8), [#allocation4], %s848_s24  ;;  %p398_p9 = scmp.lt.s32.totalorder (!%p336_p8), %s990_s14, 1 }
  0x2a   : > { %v430_v8 = vsel (!%p336_p8), %vm425_vm1, %v941_v7, 0  ;;  %552 = vrot.lane.b32.xlu1 (!%p336_p8), %v941_v7, %s1002_s12  ;;  %v943_v16 = vld [vmem:[%s358_s27] sm:$0xff] (!%p336_p8)  }
  0x2b   : > { %874 = vmatpush3.bf16.xpose.msra.mxu0 (!%p336_p8), %v430_v8  ;;  %880 = vmatpush3.bf16.msra.mxu1 (!%p336_p8), %v943_v16 }
  0x2c   : > { %891 = vmatprep.subr.bf16.mxu0 (!%p336_p8), %v1000_v6  ;;  %885 = vmatprep.subr.bf16.mxu1 (!%p336_p8), %v1000_v6 }
  0x2e   : > { %550 = vrot.lane.b32.xlu1 %v942_v9, %s1002_s12  ;;  %s1144_s14 = smov (!%p398_p9, %s990_s14), 1 }
  0x2f   : > { %s864_s28 = sshll.u32 %s1144_s14, 3 }
  0x30   : > { %s408_s4 = scalar_lea.vmem %s1135_s3, %s864_s28 }
  0x32   : > { %876 = vmatmul.mubr.msk.bf16.vlgmr.msra.gmra.mrb[0].mxu0 %vm425_vm1, %v942_v9 }
  0x33   : > { %893 = vmatprep.mubr.msk.bf16.mxu0 %vm1001_vm0, %v1000_v6 }
  0x9c   : > { %v553_v23 = vpop.permute.xlu1 %552 }
  0x9d   : > { %v558_v26 = vsel %vm425_vm1, %v553_v23, 0 }
  0xa0   : > { %v551_v28 = vpop.permute.xlu1 %550 }
 0x105   : > { %v466_v10 = vpop.f32.mrb[0].mxu0 }
 0x106   : > { %v877_v11 = vpop.f32.mrb[1].mxu0  ;;  %v474_v12 = vsel %vm473_vm2, %v466_v10, -inf }
 0x107   : > { %475 = vmax.xlane.f32.xlu0 %v474_v12  ;;  %v469_v13 = vpop.f32.mrb[2].mxu0 }
 0x108   : > { %v878_v14 = vpop.f32.mrb[3].mxu0  ;;  %v477_v15 = vsel %vm473_vm2, %v469_v13, -inf }
 0x10b   : > { %478 = vmax.xlane.f32.xlu0 %v477_v15 }
 0x194   : > { %v476_v17 = vpop.xlane.xlu0 %475 }
 0x195   : > { %v480_v18 = vsub.f32 %v466_v10, %v476_v17 }
 0x197   : > { %v482_v19 = vmul.f32 1.442695, %v480_v18 }
 0x198   : > { %v479_v20 = vpop.xlane.xlu0 %478 }
 0x199   : > { %v481_v21 = vsub.f32 %v469_v13, %v479_v20  ;;  %944 = vpow2.f32 %v482_v19 }
 0x19b   : > { %v484_v22 = vmul.f32 1.442695, %v481_v21 }
 0x19d   : > { %946 = vpow2.f32 %v484_v22 }
 0x1a3   : > { %v945_v24 = vpop.eup %944 }
 0x1a4   : > { %v486_v51 = vsel %vm473_vm2, %v945_v24, 0.0 }
 0x1a7   : > { %v947_v25 = vpop.eup %946 }
 0x1a8   : > { %v494_v27 = vpack.c.bf16 %v947_v25, %v945_v24  ;;  %v489_v52 = vsel %vm473_vm2, %v947_v25, 0.0 }
 0x1aa   : > { %882 = vmatmul.mubr.msk.bf16.vlgmr.msra.gmra.mrb[0].mxu1 %vm473_vm2, %v494_v27 }
 0x1ab   : > { %886 = vmatpush3.bf16.xpose.msra.mxu1 %v558_v26  ;;  %887 = vmatprep.mubr.msk.bf16.mxu1 %vm1001_vm0, %v1000_v6 }
 0x1b2   : > { %888 = vmatmul.mubr.msk.bf16.vlgmr.msra.gmra.mrb[4].mxu1 %vm425_vm1, %v551_v28 }
 0x27d   : > { %v538_v29 = vpop.f32.mrb[0].mxu1 }
 0x27e   : > { %v883_v30 = vpop.f32.mrb[1].mxu1 }
 0x27f   : > { %v541_v31 = vpop.f32.mrb[2].mxu1 }
 0x280   : > { %v884_v32 = vpop.f32.mrb[3].mxu1 }
 0x285   : > { %v594_v33 = vpop.f32.mrb[4].mxu1 }
 0x286   : > { %v889_v34 = vpop.f32.mrb[5].mxu1  ;;  %v601_v35 = vsel %vm473_vm2, %v594_v33, -inf }
 0x287   : > { %602 = vmax.xlane.f32.xlu0 %v601_v35  ;;  %v597_v36 = vpop.f32.mrb[6].mxu1 }
 0x288   : > { %v890_v37 = vpop.f32.mrb[7].mxu1  ;;  %v604_v38 = vsel %vm473_vm2, %v597_v36, -inf }
 0x289   : > { %605 = vmax.xlane.f32.xlu1 %v604_v38 }
 0x29d   : > { %620 = vrot.lane.b32.xlu0 %v943_v16, %s1002_s12 }
 0x314   : > { %v603_v39 = vpop.xlane.xlu0 %602 }
 0x315   : > { %v607_v40 = vsub.f32 %v594_v33, %v603_v39 }
 0x316   : > { %v606_v41 = vpop.xlane.xlu1 %605 }
 0x317   : > { %v609_v42 = vmul.f32 1.442695, %v607_v40  ;;  %v608_v43 = vsub.f32 %v597_v36, %v606_v41 }
 0x318   : > { %v621_v44 = vpop.permute.xlu0 %620 }
 0x319   : > { %948 = vpow2.f32 %v609_v42  ;;  %v611_v45 = vmul.f32 1.442695, %v608_v43  ;;  %892 = vmatpush3.bf16.msra.mxu0 %v621_v44 }
 0x31b   : > { %950 = vpow2.f32 %v611_v45 }
 0x323   : > { %v949_v46 = vpop.eup %948 }
 0x324   : > { %v613_v47 = vsel %vm473_vm2, %v949_v46, 0.0 }
 0x325   : > { %v951_v48 = vpop.eup %950  ;;  %614 = vadd.xlane.f32.xlu0 %v613_v47 }
 0x326   : > { %v616_v49 = vsel %vm473_vm2, %v951_v48, 0.0  ;;  %v619_v50 = vpack.c.bf16 %v951_v48, %v949_v46 }
 0x327   : > { %617 = vadd.xlane.f32.xlu1 %v616_v49 }
 0x328   : > { %894 = vmatmul.mubr.msk.bf16.vlgmr.msra.gmra.mrb[4].mxu0 %vm473_vm2, %v619_v50 }
 0x32b   : > { %487 = vadd.xlane.f32.xlu1 %v486_v51 }
 0x32f   : > { %490 = vadd.xlane.f32.xlu1 %v489_v52 }
 0x3b2   : > { %v615_v61 = vpop.xlane.xlu0 %614 }
 0x3b4   : > { %v618_v53 = vpop.xlane.xlu1 %617 }
 0x3b8   : > { %v488_v54 = vpop.xlane.xlu1 %487 }
 0x3b9   : > { %952 = vrcp.f32 %v488_v54 }
 0x3bc   : > { %v491_v55 = vpop.xlane.xlu1 %490 }
 0x3bd   : > { %954 = vrcp.f32 %v491_v55 }
 0x3be   : > { %956 = vrcp.f32 %v615_v61 }
 0x3bf   : > { %958 = vrcp.f32 %v618_v53 }
 0x3c3   : > { %v953_v56 = vpop.eup %952 }
 0x3c4   : > { %v547_v58 = vmul.f32 %v953_v56, %v538_v29 }
 0x3c7   : > { %v955_v57 = vpop.eup %954 }
 0x3c8   : > { %v548_v59 = vmul.f32 %v955_v57, %v541_v31  ;;  %v957_v63 = vpop.eup %956 }
 0x3c9   : > { %v959_v1 = vpop.eup %958 }
 0x3ca   : > { %v549_v60 = vpack.c.bf16 %v548_v59, %v547_v58 }
 0x3fb   : > { %v660_v62 = vpop.f32.mrb[4].mxu0 }
 0x3fc   : > { %v895_v0 = vpop.f32.mrb[5].mxu0  ;;  %v669_v3 = vmul.f32 %v957_v63, %v660_v62 }
 0x3fd   : > { %v663_v2 = vpop.f32.mrb[6].mxu0 }
 0x3fe   : > { %v670_v4 = vmul.f32 %v959_v1, %v663_v2  ;;  %v896_v5 = vpop.f32.mrb[7].mxu0 }
 0x400   : > { %v671_v6 = vpack.c.bf16 %v670_v4, %v669_v3 }
 0x402   : > { %673 = vrot.lane.b32.xlu1 %v671_v6, %s1002_s12 }
 0x474   : > { %v674_v7 = vpop.permute.xlu1 %673 }
 0x475   : > { %v677_v8 = vsel %vm425_vm1, %v549_v60, %v674_v7 }
 0x476   : > { %v860_v9 = vcombine.low %v677_v8, %v677_v8  ;;  %v861_v10 = vcombine.high %v677_v8, %v677_v8 }
 0x478   : > { %685 = vst [vmem:[%s408_s4] sm:$0xf] %v860_v9  ;;  %686 = vst [vmem:[%s408_s4 + $0x4] sm:$0xf] %v861_v10 }
 0x479 PF: > { %s13_s16 = sadd.s32 1, %s998_s16   ;;  %s1137_s12 = smov %s986_s13 }
 0x47a   : > { %p10_p10 = scmp.ge.s32.totalorder %s13_s16, 4   ;;  %s1138_s13 = smov %s1062_s21 }
 0x47b   : > { %s1139_s14 = smov %s994_s15  ;;  %s1140_s15 = smov %s1142_s17 }
 0x47c   :  { %12 = sbr.rel (!%p10_p10) target bundleno = 3 (0x3), region = 206 }

// kernel: block_forward.7
= control target key start
LH: loop header
LB: loop body
LE: loop exit
PB: predicated region body
PF: predicated region fallthrough
CT: control target
= control target key end

     0   :  { %s334_s1 = inlined_call_operand.vmem [shape: bf16[128,128], index: 1, kind: input, shape index: {}]   ;;  %s335_s0 = inlined_call_operand.vmem [shape: bf16[32,128], index: 0, kind: input, shape index: {}]   ;;  %s336_s2 = inlined_call_operand.vmem [shape: f32[1,128], index: 2, kind: input, shape index: {}]   ;;  %s337_s3 = inlined_call_operand.vmem [shape: f32[32,128], index: 3, kind: input, shape index: {}]   ;;  %s338_s4 = inlined_call_operand.vmem [shape: f32[32,128], index: 4, kind: output, shape index: {}]  }
   0x1   :  { %v242_v0 = vld [vmem:[%s334_s1] sm:$0xff]   ;;  %v243_v1 = vld [vmem:[%s334_s1 + $0x8] sm:$0xff]   ;;  %v244_v2 = vld [vmem:[%s334_s1 + $0x10] sm:$0xff]  }
   0x2   :  { %222 = vmatprep.subr.bf16.mxu0 %v242_v0  ;;  %v245_v3 = vld [vmem:[%s334_s1 + $0x18] sm:$0xff]   ;;  %v250_v4 = vld [vmem:[%s335_s0] sm:$0xff]   ;;  %v247_v6 = vld [vmem:[%s334_s1 + $0x28] sm:$0xff]  }
   0x3   :  { %223 = vmatpush3.bf16.msra.mxu0 %v242_v0  ;;  %238 = vmatprep.mubr.bf16.mxu0 %v250_v4  ;;  %v246_v5 = vld [vmem:[%s334_s1 + $0x20] sm:$0xff]   ;;  %v248_v7 = vld [vmem:[%s334_s1 + $0x30] sm:$0xff]   ;;  %v249_v8 = vld [vmem:[%s334_s1 + $0x38] sm:$0xff]  }
   0x4   :  { %224 = vmatprep.subr.bf16.mxu0 %v243_v1  ;;  %v251_v9 = vld [vmem:[%s335_s0 + $0x8] sm:$0xff]   ;;  %v211_v10 = vld [vmem:[%s336_s2] ss:$0 sm:$0xff]  ;;  %v187_v12 = vld [vmem:[%s337_s3 + $0x10] sm:$0xff] }
   0x5   :  { %v185_v15 = vld [vmem:[%s337_s3] sm:$0xff]  ;;  %v188_v18 = vld [vmem:[%s337_s3 + $0x18] sm:$0xff]  ;;  %v186_v22 = vld [vmem:[%s337_s3 + $0x8] sm:$0xff] }
   0x7   :  { %225 = vmatpush3.bf16.msra.mxu0 %v243_v1 }
   0x8   :  { %226 = vmatprep.subr.bf16.mxu0 %v244_v2 }
   0xb   :  { %227 = vmatpush3.bf16.msra.mxu0 %v244_v2 }
   0xc   :  { %228 = vmatprep.subr.bf16.mxu0 %v245_v3 }
   0xf   :  { %229 = vmatpush3.bf16.msra.mxu0 %v245_v3 }
  0x10   :  { %230 = vmatprep.subr.bf16.mxu0 %v246_v5 }
  0x13   :  { %231 = vmatpush3.bf16.msra.mxu0 %v246_v5 }
  0x14   :  { %232 = vmatprep.subr.bf16.mxu0 %v247_v6 }
  0x17   :  { %233 = vmatpush3.bf16.msra.mxu0 %v247_v6 }
  0x18   :  { %234 = vmatprep.subr.bf16.mxu0 %v248_v7 }
  0x1b   :  { %235 = vmatpush3.bf16.msra.mxu0 %v248_v7 }
  0x1c   :  { %236 = vmatprep.subr.bf16.mxu0 %v249_v8 }
  0x1f   :  { %237 = vmatpush3.bf16.msra.mxu0 %v249_v8 }
  0x22   :  { %239 = vmatmul.mubr.bf16.vlgmr.msra.gmra.mrb[0].mxu0 %v251_v9 }
  0xf5   :  { %v240_v11 = vpop.f32.mrb[0].mxu0 }
  0xf6   :  { %v183_v13 = vadd.f32 %v240_v11, %v211_v10  ;;  %v144_v14 = vpop.f32.mrb[1].mxu0 }
  0xf7   :  { %v181_v16 = vadd.f32 %v211_v10, %v144_v14  ;;  %v241_v17 = vpop.f32.mrb[2].mxu0 }
  0xf8   :  { %v191_v19 = vadd.f32 %v187_v12, %v183_v13  ;;  %v184_v20 = vadd.f32 %v241_v17, %v211_v10  ;;  %v147_v21 = vpop.f32.mrb[3].mxu0 }
  0xf9   :  { %v189_v23 = vadd.f32 %v185_v15, %v181_v16  ;;  %v182_v24 = vadd.f32 %v211_v10, %v147_v21 }
  0xfa   :  { %195 = vst [vmem:[%s338_s4 + $0x10] sm:$0xff] %v191_v19  ;;  %v192_v25 = vadd.f32 %v188_v18, %v184_v20 }
  0xfb   :  { %193 = vst [vmem:[%s338_s4] sm:$0xff] %v189_v23  ;;  %v190_v26 = vadd.f32 %v186_v22, %v182_v24 }
  0xfc   :  { %196 = vst [vmem:[%s338_s4 + $0x18] sm:$0xff] %v192_v25 }
  0xfd   :  { %194 = vst [vmem:[%s338_s4 + $0x8] sm:$0xff] %v190_v26 }

// kernel: block_forward.8
= control target key start
LH: loop header
LB: loop body
LE: loop exit
PB: predicated region body
PF: predicated region fallthrough
CT: control target
= control target key end

     0   :  { %v860_v50 = vmov 0   ;;  %s1183_s0 = inlined_call_operand.vmem [shape: f32[32,128], index: 0, kind: input, shape index: {}]   ;;  %s1184_s1 = inlined_call_operand.vmem [shape: bf16[128,512], index: 1, kind: input, shape index: {}]   ;;  %s1185_s2 = inlined_call_operand.vmem [shape: f32[1,128], index: 2, kind: input, shape index: {}]   ;;  %s1186_s3 = inlined_call_operand.vmem [shape: f32[1,128], index: 3, kind: input, shape index: {}]   ;;  %s1187_s4 = inlined_call_operand.vmem [shape: f32[1,512], index: 4, kind: input, shape index: {}]   ;;  %s1188_s5 = inlined_call_operand.vmem [shape: bf16[32,512], index: 5, kind: output, shape index: {}]  }
   0x1   :  { %v41_v0 = vld [vmem:[%s1183_s0] sm:$0xff]  ;;  %v43_v1 = vld [vmem:[%s1183_s0 + $0x10] sm:$0xff]  ;;  %v42_v2 = vld [vmem:[%s1183_s0 + $0x8] sm:$0xff]  ;;  %354 = vmatprep.mubr.bf16.mxu0 %v860_v50  ;;  %407 = vmatprep.mubr.bf16.mxu1 %v860_v50 }
   0x2   :  { %45 = vadd.xlane.f32.xlu0 %v41_v0  ;;  %49 = vadd.xlane.f32.xlu1 %v43_v1  ;;  %v44_v3 = vld [vmem:[%s1183_s0 + $0x18] sm:$0xff]  ;;  %v772_v4 = vld [vmem:[%s1184_s1 + $0x4] ss:$16 sps:$4 sm:$0xff]   ;;  %v776_v6 = vld [vmem:[%s1184_s1] ss:$16 sps:$4 sm:$0xff]  }
   0x3   :  { %v774_v5 = vld [vmem:[%s1184_s1 + $0xc] ss:$16 sps:$4 sm:$0xff]   ;;  %322 = vmatprep.subr.bf16.mxu0 %v772_v4  ;;  %v777_v7 = vld [vmem:[%s1184_s1 + $0x8] ss:$16 sps:$4 sm:$0xff]   ;;  %v778_v8 = vld [vmem:[%s1184_s1 + $0x24] ss:$16 sps:$4 sm:$0xff]  }
   0x4   :  { %375 = vmatprep.subr.bf16.mxu1 %v774_v5  ;;  %323 = vmatpush1.bf16.msra.mxu0 %v776_v6  ;;  %v780_v9 = vld [vmem:[%s1184_s1 + $0x2c] ss:$16 sps:$4 sm:$0xff]   ;;  %v782_v26 = vld [vmem:[%s1184_s1 + $0x20] ss:$16 sps:$4 sm:$0xff]   ;;  %v783_v27 = vld [vmem:[%s1184_s1 + $0x28] ss:$16 sps:$4 sm:$0xff]  }
   0x5   :  { %376 = vmatpush1.bf16.msra.mxu1 %v777_v7  ;;  %324 = vmatprep.subr.bf16.mxu0 %v778_v8  ;;  %v784_v28 = vld [vmem:[%s1184_s1 + $0x44] ss:$16 sps:$4 sm:$0xff]   ;;  %v786_v29 = vld [vmem:[%s1184_s1 + $0x4c] ss:$16 sps:$4 sm:$0xff]   ;;  %v788_v30 = vld [vmem:[%s1184_s1 + $0x40] ss:$16 sps:$4 sm:$0xff]  }
   0x6   :  { %47 = vadd.xlane.f32.xlu0 %v42_v2  ;;  %51 = vadd.xlane.f32.xlu1 %v44_v3  ;;  %v789_v31 = vld [vmem:[%s1184_s1 + $0x48] ss:$16 sps:$4 sm:$0xff]   ;;  %v790_v32 = vld [vmem:[%s1184_s1 + $0x64] ss:$16 sps:$4 sm:$0xff]   ;;  %v792_v33 = vld [vmem:[%s1184_s1 + $0x6c] ss:$16 sps:$4 sm:$0xff]  }
   0x7   :  { %377 = vmatprep.subr.bf16.mxu1 %v780_v9  ;;  %v794_v34 = vld [vmem:[%s1184_s1 + $0x60] ss:$16 sps:$4 sm:$0xff]   ;;  %v795_v35 = vld [vmem:[%s1184_s1 + $0x68] ss:$16 sps:$4 sm:$0xff]   ;;  %v796_v36 = vld [vmem:[%s1184_s1 + $0x84] ss:$16 sps:$4 sm:$0xff]  }
   0x8   :  { %325 = vmatpush1.bf16.msra.mxu0 %v782_v26  ;;  %v798_v37 = vld [vmem:[%s1184_s1 + $0x8c] ss:$16 sps:$4 sm:$0xff]   ;;  %v800_v38 = vld [vmem:[%s1184_s1 + $0x80] ss:$16 sps:$4 sm:$0xff]   ;;  %v801_v39 = vld [vmem:[%s1184_s1 + $0x88] ss:$16 sps:$4 sm:$0xff]  }
   0x9   :  { %378 = vmatpush1.bf16.msra.mxu1 %v783_v27  ;;  %326 = vmatprep.subr.bf16.mxu0 %v784_v28  ;;  %v802_v40 = vld [vmem:[%s1184_s1 + $0xa4] ss:$16 sps:$4 sm:$0xff]   ;;  %v804_v41 = vld [vmem:[%s1184_s1 + $0xac] ss:$16 sps:$4 sm:$0xff]   ;;  %v806_v42 = vld [vmem:[%s1184_s1 + $0xa0] ss:$16 sps:$4 sm:$0xff]  }
   0xa   :  { %379 = vmatprep.subr.bf16.mxu1 %v786_v29  ;;  %v807_v43 = vld [vmem:[%s1184_s1 + $0xa8] ss:$16 sps:$4 sm:$0xff]   ;;  %v808_v44 = vld [vmem:[%s1184_s1 + $0xc4] ss:$16 sps:$4 sm:$0xff]   ;;  %v810_v45 = vld [vmem:[%s1184_s1 + $0xcc] ss:$16 sps:$4 sm:$0xff]  }
   0xb   :  { %v812_v46 = vld [vmem:[%s1184_s1 + $0xc0] ss:$16 sps:$4 sm:$0xff]   ;;  %v813_v47 = vld [vmem:[%s1184_s1 + $0xc8] ss:$16 sps:$4 sm:$0xff]   ;;  %v814_v48 = vld [vmem:[%s1184_s1 + $0xe4] ss:$16 sps:$4 sm:$0xff]  }
   0xc   :  { %327 = vmatpush1.bf16.msra.mxu0 %v788_v30  ;;  %v816_v49 = vld [vmem:[%s1184_s1 + $0xec] ss:$16 sps:$4 sm:$0xff]   ;;  %v818_v51 = vld [vmem:[%s1184_s1 + $0xe0] ss:$16 sps:$4 sm:$0xff]   ;;  %v819_v52 = vld [vmem:[%s1184_s1 + $0xe8] ss:$16 sps:$4 sm:$0xff]  }
   0xd   :  { %380 = vmatpush1.bf16.msra.mxu1 %v789_v31  ;;  %328 = vmatprep.subr.bf16.mxu0 %v790_v32  ;;  %v722_v8 = vld [vmem:[%s1186_s3] ss:$0 sm:$0xff] }
   0xe   :  { %381 = vmatprep.subr.bf16.mxu1 %v792_v33 }
  0x10   :  { %329 = vmatpush1.bf16.msra.mxu0 %v794_v34 }
  0x11   :  { %382 = vmatpush1.bf16.msra.mxu1 %v795_v35  ;;  %330 = vmatprep.subr.bf16.mxu0 %v796_v36 }
  0x12   :  { %383 = vmatprep.subr.bf16.mxu1 %v798_v37 }
  0x14   :  { %331 = vmatpush1.bf16.msra.mxu0 %v800_v38 }
  0x15   :  { %384 = vmatpush1.bf16.msra.mxu1 %v801_v39  ;;  %332 = vmatprep.subr.bf16.mxu0 %v802_v40 }
  0x16   :  { %385 = vmatprep.subr.bf16.mxu1 %v804_v41 }
  0x18   :  { %333 = vmatpush1.bf16.msra.mxu0 %v806_v42 }
  0x19   :  { %386 = vmatpush1.bf16.msra.mxu1 %v807_v43  ;;  %334 = vmatprep.subr.bf16.mxu0 %v808_v44 }
  0x1a   :  { %387 = vmatprep.subr.bf16.mxu1 %v810_v45 }
  0x1c   :  { %335 = vmatpush1.bf16.msra.mxu0 %v812_v46 }
  0x1d   :  { %388 = vmatpush1.bf16.msra.mxu1 %v813_v47  ;;  %336 = vmatprep.subr.bf16.mxu0 %v814_v48 }
  0x1e   :  { %389 = vmatprep.subr.bf16.mxu1 %v816_v49 }
  0x20   :  { %337 = vmatpush1.bf16.msra.mxu0 %v818_v51 }
  0x21   :  { %390 = vmatpush1.bf16.msra.mxu1 %v819_v52 }
  0x8f   :  { %v46_v10 = vpop.xlane.xlu0 %45  ;;  %v50_v11 = vpop.xlane.xlu1 %49 }
  0x90   :  { %v54_v12 = vmul.f32 0.0078125, %v46_v10  ;;  %v56_v13 = vmul.f32 0.0078125, %v50_v11 }
  0x92   :  { %v921_v14 = vsub.f32 %v41_v0, %v54_v12  ;;  %v923_v15 = vsub.f32 %v43_v1, %v56_v13 }
  0x93   :  { %v48_v16 = vpop.xlane.xlu0 %47  ;;  %v52_v17 = vpop.xlane.xlu1 %51 }
  0x94   :  { %v55_v18 = vmul.f32 0.0078125, %v48_v16  ;;  %v62_v19 = vmul.f32 %v921_v14, %v921_v14  ;;  %v57_v20 = vmul.f32 0.0078125, %v52_v17  ;;  %v64_v23 = vmul.f32 %v923_v15, %v923_v15 }
  0x96   :  { %v927_v21 = vsub.f32 %v42_v2, %v55_v18  ;;  %66 = vadd.xlane.f32.xlu0 %v62_v19  ;;  %v929_v22 = vsub.f32 %v44_v3, %v57_v20  ;;  %v721_v3 = vld [vmem:[%s1185_s2] ss:$0 sm:$0xff] }
  0x98   :  { %v63_v24 = vmul.f32 %v927_v21, %v927_v21  ;;  %v65_v25 = vmul.f32 %v929_v22, %v929_v22 }
  0x9a   :  { %70 = vadd.xlane.f32.xlu0 %v64_v23  ;;  %68 = vadd.xlane.f32.xlu1 %v63_v24  ;;  %v481_v23 = vlaneseq }
  0x9c   :  { %v482_v24 = vshrl.u32 %v481_v23, 7 }
  0x9e   :  { %72 = vadd.xlane.f32.xlu1 %v65_v25  ;;  %v483_v25 = vsub.s32 0, %v482_v24  ;;  %v491_v26 = vsub.s32 2, %v482_v24  ;;  %v495_v27 = vsub.s32 3, %v482_v24 }
 0x123   :  { %v67_v53 = vpop.xlane.xlu0 %66 }
 0x124   :  { %v74_v54 = vmul.f32 0.0078125, %v67_v53 }
 0x126   :  { %v78_v55 = vadd.f32 1e-05, %v74_v54 }
 0x127   :  { %v69_v56 = vpop.xlane.xlu1 %68  ;;  %v71_v57 = vpop.xlane.xlu0 %70 }
 0x128   :  { %820 = vrsqrt.f32 %v78_v55  ;;  %v75_v58 = vmul.f32 0.0078125, %v69_v56  ;;  %v76_v59 = vmul.f32 0.0078125, %v71_v57 }
 0x12a   :  { %v79_v60 = vadd.f32 1e-05, %v75_v58  ;;  %v80_v61 = vadd.f32 1e-05, %v76_v59 }
 0x12b   :  { %v73_v62 = vpop.xlane.xlu1 %72 }
 0x12c   :  { %822 = vrsqrt.f32 %v79_v60  ;;  %v77_v63 = vmul.f32 0.0078125, %v73_v62 }
 0x12d   :  { %824 = vrsqrt.f32 %v80_v61 }
 0x12e   :  { %v81_v0 = vadd.f32 1e-05, %v77_v63 }
 0x130   :  { %826 = vrsqrt.f32 %v81_v0 }
 0x132   :  { %v821_v1 = vpop.eup %820 }
 0x133   :  { %v86_v2 = vmul.f32 %v821_v1, %v921_v14 }
 0x135   :  { %v97_v6 = vmul.f32 %v721_v3, %v86_v2 }
 0x136   :  { %v823_v4 = vpop.eup %822 }
 0x137   :  { %v87_v5 = vmul.f32 %v823_v4, %v927_v21  ;;  %v825_v7 = vpop.eup %824  ;;  %v108_v11 = vadd.f32 %v722_v8, %v97_v6 }
 0x138   :  { %v88_v13 = vmul.f32 %v825_v7, %v923_v15  ;;  %v479_v15 = vld [vmem:[%s1187_s4] sm:$0xf] }
 0x139   :  { %v98_v9 = vmul.f32 %v721_v3, %v87_v5  ;;  %v1028_v28 = vrot.slane %v479_v15, %v483_v25  ;;  %v1030_v29 = vrot.slane %v479_v15, %v491_v26  ;;  %v1034_v31 = vrot.slane %v479_v15, %v495_v27 }
 0x13a   :  { %v827_v10 = vpop.eup %826  ;;  %v99_v18 = vmul.f32 %v721_v3, %v88_v13 }
 0x13b   :  { %v109_v12 = vadd.f32 %v722_v8, %v98_v9  ;;  %v89_v14 = vmul.f32 %v827_v10, %v929_v22  ;;  %v487_v22 = vsub.s32 1, %v482_v24 }
 0x13c   :  { %v110_v20 = vadd.f32 %v722_v8, %v99_v18 }
 0x13d   :  { %v112_v16 = vpack.c.bf16 %v109_v12, %v108_v11  ;;  %v100_v17 = vmul.f32 %v721_v3, %v89_v14  ;;  %v1032_v30 = vrot.slane %v479_v15, %v487_v22 }
 0x13f   :  { %355 = vmatmul.mubr.bf16.vlgmr.msra.gmra.mrb[0].mxu0 %v112_v16  ;;  %408 = vmatmul.mubr.bf16.vlgmr.msra.gmra.mrb[0].mxu1 %v112_v16  ;;  %v111_v19 = vadd.f32 %v722_v8, %v100_v17 }
 0x140   :  { %364 = vmatprep.mubr.bf16.mxu0 %v860_v50  ;;  %417 = vmatprep.mubr.bf16.mxu1 %v860_v50 }
 0x141   :  { %v113_v21 = vpack.c.bf16 %v111_v19, %v110_v20 }
 0x147   :  { %365 = vmatmul.mubr.bf16.gmra.mrb[4].mxu0 %v113_v21  ;;  %418 = vmatmul.mubr.bf16.gmra.mrb[4].mxu1 %v113_v21 }
 0x212   :  { %v356_v32 = vpop.f32.mrb[0].mxu0  ;;  %v409_v33 = vpop.f32.mrb[0].mxu1 }
 0x213   :  { %v1037_v34 = vadd.f32 %v1028_v28, %v356_v32  ;;  %v1040_v35 = vadd.f32 %v1030_v29, %v409_v33  ;;  %v358_v36 = vpop.f32.mrb[1].mxu0  ;;  %v411_v37 = vpop.f32.mrb[1].mxu1 }
 0x214   :  { %v1043_v38 = vadd.f32 %v1032_v30, %v358_v36  ;;  %v1046_v39 = vadd.f32 %v1034_v31, %v411_v37  ;;  %v360_v40 = vpop.f32.mrb[2].mxu0  ;;  %v413_v41 = vpop.f32.mrb[2].mxu1 }
 0x215   :  { %v533_v42 = vmul.f32 0.044715, %v1037_v34  ;;  %v535_v43 = vmul.f32 0.044715, %v1040_v35  ;;  %v1055_v48 = vadd.f32 %v1028_v28, %v360_v40  ;;  %v1058_v49 = vadd.f32 %v1030_v29, %v413_v41  ;;  %v362_v50 = vpop.f32.mrb[3].mxu0  ;;  %v415_v51 = vpop.f32.mrb[3].mxu1 }
 0x216   :  { %v534_v44 = vmul.f32 0.044715, %v1043_v38  ;;  %v536_v45 = vmul.f32 0.044715, %v1046_v39  ;;  %v1063_v54 = vadd.f32 %v1032_v30, %v362_v50  ;;  %v1075_v2 = vadd.f32 %v1034_v31, %v415_v51 }
 0x217   :  { %v549_v46 = vmul.f32 %v533_v42, %v1037_v34  ;;  %v551_v47 = vmul.f32 %v535_v43, %v1040_v35  ;;  %v537_v57 = vmul.f32 0.044715, %v1055_v48  ;;  %v539_v60 = vmul.f32 0.044715, %v1058_v49 }
 0x218   :  { %v550_v52 = vmul.f32 %v534_v44, %v1043_v38  ;;  %v552_v53 = vmul.f32 %v536_v45, %v1046_v39  ;;  %v538_v8 = vmul.f32 0.044715, %v1063_v54  ;;  %v540_v23 = vmul.f32 0.044715, %v1075_v2 }
 0x219   :  { %v565_v55 = vmul.f32 %v549_v46, %v1037_v34  ;;  %v567_v56 = vmul.f32 %v551_v47, %v1040_v35  ;;  %v553_v1 = vmul.f32 %v537_v57, %v1055_v48  ;;  %v555_v7 = vmul.f32 %v539_v60, %v1058_v49 }
 0x21a   :  { %v566_v58 = vmul.f32 %v550_v52, %v1043_v38  ;;  %v568_v59 = vmul.f32 %v552_v53, %v1046_v39  ;;  %v366_v61 = vpop.f32.mrb[4].mxu0  ;;  %v419_v62 = vpop.f32.mrb[4].mxu1  ;;  %v554_v19 = vmul.f32 %v538_v8, %v1063_v54  ;;  %v556_v27 = vmul.f32 %v540_v23, %v1075_v2 }
 0x21b   :  { %v581_v63 = vadd.f32 %v565_v55, %v1037_v34  ;;  %v583_v0 = vadd.f32 %v567_v56, %v1040_v35  ;;  %v368_v3 = vpop.f32.mrb[5].mxu0  ;;  %v421_v4 = vpop.f32.mrb[5].mxu1  ;;  %v569_v13 = vmul.f32 %v553_v1, %v1055_v48  ;;  %v571_v18 = vmul.f32 %v555_v7, %v1058_v49 }
 0x21c   :  { %v582_v5 = vadd.f32 %v566_v58, %v1043_v38  ;;  %v584_v6 = vadd.f32 %v568_v59, %v1046_v39  ;;  %v370_v9 = vpop.f32.mrb[6].mxu0  ;;  %v1081_v10 = vpop.f32.mrb[6].mxu1  ;;  %v1093_v24 = vadd.f32 %v1028_v28, %v366_v61  ;;  %v570_v26 = vmul.f32 %v554_v19, %v1063_v54 }
 0x21d   :  { %v597_v11 = vmul.f32 0.7978846, %v581_v63  ;;  %v599_v12 = vmul.f32 0.7978846, %v583_v0  ;;  %v1084_v14 = vpop.f32.mrb[7].mxu0  ;;  %v1088_v20 = vpop.f32.mrb[7].mxu1  ;;  %v585_v21 = vadd.f32 %v569_v13, %v1055_v48  ;;  %v587_v25 = vadd.f32 %v571_v18, %v1058_v49 }
 0x21e   :  { %v598_v16 = vmul.f32 0.7978846, %v582_v5  ;;  %v600_v17 = vmul.f32 0.7978846, %v584_v6  ;;  %v1098_v15 = vadd.f32 %v1030_v29, %v419_v62  ;;  %v586_v33 = vadd.f32 %v570_v26, %v1063_v54 }
 0x21f   :  { %828 = vtanh.f32 %v597_v11  ;;  %v601_v22 = vmul.f32 0.7978846, %v585_v21  ;;  %v603_v32 = vmul.f32 0.7978846, %v587_v25  ;;  %v541_v36 = vmul.f32 0.044715, %v1093_v24 }
 0x220   :  { %830 = vtanh.f32 %v599_v12  ;;  %v517_v37 = vmul.f32 0.5, %v1037_v34  ;;  %v572_v40 = vmul.f32 %v556_v27, %v1075_v2  ;;  %v543_v41 = vmul.f32 0.044715, %v1098_v15 }
 0x221   :  { %832 = vtanh.f32 %v598_v16  ;;  %v602_v42 = vmul.f32 0.7978846, %v586_v33  ;;  %v557_v43 = vmul.f32 %v541_v36, %v1093_v24  ;;  %v1108_v44 = vadd.f32 %v1032_v30, %v368_v3 }
 0x222   :  { %834 = vtanh.f32 %v600_v17  ;;  %v588_v45 = vadd.f32 %v572_v40, %v1075_v2  ;;  %v559_v46 = vmul.f32 %v543_v41, %v1098_v15  ;;  %v1113_v47 = vadd.f32 %v1034_v31, %v421_v4 }
 0x223   :  { %836 = vtanh.f32 %v601_v22  ;;  %v1116_v34 = vadd.f32 %v1028_v28, %v370_v9  ;;  %v519_v50 = vmul.f32 0.5, %v1040_v35  ;;  %v573_v51 = vmul.f32 %v557_v43, %v1093_v24 }
 0x224   :  { %838 = vtanh.f32 %v603_v32  ;;  %v542_v52 = vmul.f32 0.044715, %v1108_v44  ;;  %v518_v53 = vmul.f32 0.5, %v1043_v38  ;;  %v604_v55 = vmul.f32 0.7978846, %v588_v45 }
 0x225   :  { %840 = vtanh.f32 %v602_v42  ;;  %v575_v56 = vmul.f32 %v559_v46, %v1098_v15  ;;  %v544_v57 = vmul.f32 0.044715, %v1113_v47  ;;  %v520_v58 = vmul.f32 0.5, %v1046_v39 }
 0x226   :  { %v589_v59 = vadd.f32 %v573_v51, %v1093_v24  ;;  %v558_v28 = vmul.f32 %v542_v52, %v1108_v44  ;;  %v545_v35 = vmul.f32 0.044715, %v1116_v34  ;;  %v521_v61 = vmul.f32 0.5, %v1055_v48 }
 0x227   :  { %842 = vtanh.f32 %v604_v55  ;;  %v591_v62 = vadd.f32 %v575_v56, %v1098_v15  ;;  %v560_v38 = vmul.f32 %v544_v57, %v1113_v47  ;;  %v1136_v48 = vadd.f32 %v1030_v29, %v1081_v10 }
 0x228   :  { %v605_v1 = vmul.f32 0.7978846, %v589_v59  ;;  %v574_v3 = vmul.f32 %v558_v28, %v1108_v44  ;;  %v561_v39 = vmul.f32 %v545_v35, %v1116_v34  ;;  %v522_v10 = vmul.f32 0.5, %v1063_v54 }
 0x229   :  { %v829_v60 = vpop.eup %828  ;;  %v607_v6 = vmul.f32 0.7978846, %v591_v62  ;;  %v576_v7 = vmul.f32 %v560_v38, %v1113_v47  ;;  %v547_v27 = vmul.f32 0.044715, %v1136_v48  ;;  %v523_v43 = vmul.f32 0.5, %v1058_v49 }
 0x22a   :  { %v831_v63 = vpop.eup %830  ;;  %v629_v0 = vadd.f32 1.0, %v829_v60  ;;  %844 = vtanh.f32 %v605_v1  ;;  %v590_v12 = vadd.f32 %v574_v3, %v1108_v44  ;;  %v577_v26 = vmul.f32 %v561_v39, %v1116_v34 }
 0x22b   :  { %v833_v4 = vpop.eup %832  ;;  %v631_v5 = vadd.f32 1.0, %v831_v63  ;;  %846 = vtanh.f32 %v607_v6  ;;  %v592_v18 = vadd.f32 %v576_v7, %v1113_v47  ;;  %v563_v54 = vmul.f32 %v547_v27, %v1136_v48 }
 0x22c   :  { %v835_v8 = vpop.eup %834  ;;  %v645_v9 = vmul.f32 %v629_v0, %v517_v37  ;;  %v630_v11 = vadd.f32 1.0, %v833_v4  ;;  %v606_v25 = vmul.f32 0.7978846, %v590_v12  ;;  %v593_v42 = vadd.f32 %v577_v26, %v1116_v34 }
 0x22d   :  { %v837_v13 = vpop.eup %836  ;;  %v647_v16 = vmul.f32 %v631_v5, %v519_v50  ;;  %v632_v17 = vadd.f32 1.0, %v835_v8  ;;  %v608_v22 = vmul.f32 0.7978846, %v592_v18  ;;  %v514_v45 = vadd.f32 %v1032_v30, %v1084_v14 }
 0x22e   :  { %v839_v19 = vpop.eup %838  ;;  %v646_v21 = vmul.f32 %v630_v11, %v518_v53  ;;  %v633_v23 = vadd.f32 1.0, %v837_v13  ;;  %848 = vtanh.f32 %v606_v25  ;;  %v516_v46 = vadd.f32 %v1034_v31, %v1088_v20 }
 0x22f   :  { %v648_v29 = vmul.f32 %v632_v17, %v520_v58  ;;  %v841_v32 = vpop.eup %840  ;;  %v635_v37 = vadd.f32 1.0, %v839_v19  ;;  %850 = vtanh.f32 %v608_v22  ;;  %v524_v53 = vmul.f32 0.5, %v1075_v2 }
 0x230   :  { %v763_v33 = vpack.c.bf16 %v646_v21, %v645_v9  ;;  %v649_v36 = vmul.f32 %v633_v23, %v521_v61  ;;  %v634_v41 = vadd.f32 1.0, %v841_v32  ;;  %v579_v49 = vmul.f32 %v563_v54, %v1136_v48 }
 0x231   :  { %v764_v40 = vpack.c.bf16 %v648_v29, %v647_v16  ;;  %v843_v50 = vpop.eup %842  ;;  %v651_v52 = vmul.f32 %v635_v37, %v523_v43  ;;  %v609_v57 = vmul.f32 0.7978846, %v593_v42  ;;  %v546_v58 = vmul.f32 0.044715, %v514_v45 }
 0x232   :  { %709 = vst [vmem:[%s1188_s5] sm:$0xff] %v763_v33  ;;  %v650_v51 = vmul.f32 %v634_v41, %v522_v10  ;;  %v636_v55 = vadd.f32 1.0, %v843_v50  ;;  %v548_v59 = vmul.f32 0.044715, %v516_v46  ;;  %v595_v31 = vadd.f32 %v579_v49, %v1136_v48 }
 0x233   :  { %710 = vst [vmem:[%s1188_s5 + $0x8] sm:$0xff] %v764_v40  ;;  %v562_v35 = vmul.f32 %v546_v58, %v514_v45  ;;  %v525_v38 = vmul.f32 0.5, %v1093_v24  ;;  %852 = vtanh.f32 %v609_v57  ;;  %v527_v3 = vmul.f32 0.5, %v1098_v15 }
 0x234   :  { %v765_v56 = vpack.c.bf16 %v650_v51, %v649_v36  ;;  %v845_v30 = vpop.eup %844  ;;  %v652_v14 = vmul.f32 %v636_v55, %v524_v53  ;;  %v564_v60 = vmul.f32 %v548_v59, %v516_v46  ;;  %v611_v62 = vmul.f32 0.7978846, %v595_v31 }
 0x235   :  { %v847_v20 = vpop.eup %846  ;;  %v637_v28 = vadd.f32 1.0, %v845_v30  ;;  %v578_v63 = vmul.f32 %v562_v35, %v514_v45  ;;  %v526_v39 = vmul.f32 0.5, %v1108_v44  ;;  %v528_v24 = vmul.f32 0.5, %v1113_v47 }
 0x236   :  { %711 = vst [vmem:[%s1188_s5 + $0x10] sm:$0xff] %v765_v56  ;;  %v766_v2 = vpack.c.bf16 %v652_v14, %v651_v52  ;;  %v639_v61 = vadd.f32 1.0, %v847_v20  ;;  %v580_v0 = vmul.f32 %v564_v60, %v516_v46  ;;  %854 = vtanh.f32 %v611_v62 }
 0x237   :  { %v653_v5 = vmul.f32 %v637_v28, %v525_v38  ;;  %v594_v7 = vadd.f32 %v578_v63, %v514_v45  ;;  %v529_v23 = vmul.f32 0.5, %v1116_v34  ;;  %v531_v26 = vmul.f32 0.5, %v1136_v48 }
 0x238   :  { %v849_v1 = vpop.eup %848  ;;  %712 = vst [vmem:[%s1188_s5 + $0x18] sm:$0xff] %v766_v2  ;;  %v596_v8 = vadd.f32 %v580_v0, %v516_v46  ;;  %v655_v9 = vmul.f32 %v639_v61, %v527_v3  ;;  %v530_v22 = vmul.f32 0.5, %v514_v45  ;;  %v532_v33 = vmul.f32 0.5, %v516_v46 }
 0x239   :  { %v851_v4 = vpop.eup %850  ;;  %v638_v6 = vadd.f32 1.0, %v849_v1  ;;  %v610_v13 = vmul.f32 0.7978846, %v594_v7 }
 0x23a   :  { %v640_v11 = vadd.f32 1.0, %v851_v4  ;;  %v612_v16 = vmul.f32 0.7978846, %v596_v8 }
 0x23b   :  { %v654_v12 = vmul.f32 %v638_v6, %v526_v39  ;;  %856 = vtanh.f32 %v610_v13 }
 0x23c   :  { %v656_v17 = vmul.f32 %v640_v11, %v528_v24  ;;  %858 = vtanh.f32 %v612_v16 }
 0x23d   :  { %v767_v18 = vpack.c.bf16 %v654_v12, %v653_v5  ;;  %v853_v15 = vpop.eup %852 }
 0x23e   :  { %v768_v19 = vpack.c.bf16 %v656_v17, %v655_v9  ;;  %v641_v47 = vadd.f32 1.0, %v853_v15 }
 0x23f   :  { %713 = vst [vmem:[%s1188_s5 + $0x20] sm:$0xff] %v767_v18 }
 0x240   :  { %714 = vst [vmem:[%s1188_s5 + $0x28] sm:$0xff] %v768_v19  ;;  %v855_v44 = vpop.eup %854  ;;  %v657_v10 = vmul.f32 %v641_v47, %v529_v23 }
 0x241   :  { %v643_v21 = vadd.f32 1.0, %v855_v44 }
 0x243   :  { %v659_v32 = vmul.f32 %v643_v21, %v531_v26 }
 0x245   :  { %v857_v25 = vpop.eup %856 }
 0x246   :  { %v859_v29 = vpop.eup %858  ;;  %v642_v27 = vadd.f32 1.0, %v857_v25 }
 0x247   :  { %v644_v36 = vadd.f32 1.0, %v859_v29 }
 0x248   :  { %v658_v37 = vmul.f32 %v642_v27, %v530_v22 }
 0x249   :  { %v660_v40 = vmul.f32 %v644_v36, %v532_v33 }
 0x24a   :  { %v769_v41 = vpack.c.bf16 %v658_v37, %v657_v10 }
 0x24b   :  { %v770_v42 = vpack.c.bf16 %v660_v40, %v659_v32 }
 0x24c   :  { %715 = vst [vmem:[%s1188_s5 + $0x30] sm:$0xff] %v769_v41 }
 0x24d   :  { %716 = vst [vmem:[%s1188_s5 + $0x38] sm:$0xff] %v770_v42 }

// kernel: block_forward.9
= control target key start
LH: loop header
LB: loop body
LE: loop exit
PB: predicated region body
PF: predicated region fallthrough
CT: control target
= control target key end

     0   :  { %s830_s0 = inlined_call_operand.vmem [shape: bf16[32,512], index: 0, kind: input, shape index: {}]   ;;  %s831_s1 = inlined_call_operand.vmem [shape: bf16[512,128], index: 1, kind: input, shape index: {}]   ;;  %s832_s2 = inlined_call_operand.vmem [shape: f32[1,128], index: 2, kind: input, shape index: {}]   ;;  %s833_s3 = inlined_call_operand.vmem [shape: f32[32,128], index: 3, kind: input, shape index: {}]   ;;  %s834_s4 = inlined_call_operand.hbm [shape: f32[32,128], index: 4, kind: output, shape index: {}]  }
   0x1   :  { %v587_v0 = vld [vmem:[%s831_s1 + $0x40] sm:$0xff]   ;;  %v591_v4 = vld [vmem:[%s831_s1 + $0x48] sm:$0xff]   ;;  %v595_v8 = vld [vmem:[%s831_s1 + $0x50] sm:$0xff]  }
   0x2   :  { %v588_v1 = vld [vmem:[%s831_s1 + $0xc0] sm:$0xff]   ;;  %528 = vmatprep.subr.bf16.mxu0 %v587_v0  ;;  %v592_v5 = vld [vmem:[%s831_s1 + $0xc8] sm:$0xff]   ;;  %v596_v9 = vld [vmem:[%s831_s1 + $0xd0] sm:$0xff]  }
   0x3   :  { %v589_v2 = vld [vmem:[%s831_s1] sm:$0xff]   ;;  %556 = vmatprep.subr.bf16.mxu1 %v588_v1  ;;  %v593_v6 = vld [vmem:[%s831_s1 + $0x8] sm:$0xff]   ;;  %v597_v10 = vld [vmem:[%s831_s1 + $0x10] sm:$0xff]  }
   0x4   :  { %v590_v3 = vld [vmem:[%s831_s1 + $0x80] sm:$0xff]   ;;  %529 = vmatpush3.bf16.msra.mxu0 %v589_v2  ;;  %v594_v7 = vld [vmem:[%s831_s1 + $0x88] sm:$0xff]   ;;  %v598_v11 = vld [vmem:[%s831_s1 + $0x90] sm:$0xff]  }
   0x5   :  { %557 = vmatpush3.bf16.msra.mxu1 %v590_v3  ;;  %530 = vmatprep.subr.bf16.mxu0 %v591_v4  ;;  %v599_v12 = vld [vmem:[%s831_s1 + $0x58] sm:$0xff]   ;;  %v603_v16 = vld [vmem:[%s831_s1 + $0x60] sm:$0xff]   ;;  %v607_v20 = vld [vmem:[%s831_s1 + $0x68] sm:$0xff]  }
   0x6   :  { %558 = vmatprep.subr.bf16.mxu1 %v592_v5  ;;  %v600_v13 = vld [vmem:[%s831_s1 + $0xd8] sm:$0xff]   ;;  %v604_v17 = vld [vmem:[%s831_s1 + $0xe0] sm:$0xff]   ;;  %v608_v21 = vld [vmem:[%s831_s1 + $0xe8] sm:$0xff]  }
   0x7   :  { %v601_v14 = vld [vmem:[%s831_s1 + $0x18] sm:$0xff]   ;;  %v605_v18 = vld [vmem:[%s831_s1 + $0x20] sm:$0xff]   ;;  %v609_v22 = vld [vmem:[%s831_s1 + $0x28] sm:$0xff]  }
   0x8   :  { %531 = vmatpush3.bf16.msra.mxu0 %v593_v6  ;;  %v602_v15 = vld [vmem:[%s831_s1 + $0x98] sm:$0xff]   ;;  %v606_v19 = vld [vmem:[%s831_s1 + $0xa0] sm:$0xff]   ;;  %v610_v23 = vld [vmem:[%s831_s1 + $0xa8] sm:$0xff]  }
   0x9   :  { %559 = vmatpush3.bf16.msra.mxu1 %v594_v7  ;;  %532 = vmatprep.subr.bf16.mxu0 %v595_v8  ;;  %v611_v24 = vld [vmem:[%s831_s1 + $0x70] sm:$0xff]   ;;  %v615_v28 = vld [vmem:[%s831_s1 + $0x78] sm:$0xff]  }
   0xa   :  { %560 = vmatprep.subr.bf16.mxu1 %v596_v9  ;;  %v612_v25 = vld [vmem:[%s831_s1 + $0xf0] sm:$0xff]   ;;  %v616_v29 = vld [vmem:[%s831_s1 + $0xf8] sm:$0xff]  }
   0xb   :  { %v613_v26 = vld [vmem:[%s831_s1 + $0x30] sm:$0xff]   ;;  %v617_v30 = vld [vmem:[%s831_s1 + $0x38] sm:$0xff]  }
   0xc   :  { %533 = vmatpush3.bf16.msra.mxu0 %v597_v10  ;;  %v614_v27 = vld [vmem:[%s831_s1 + $0xb0] sm:$0xff]   ;;  %v618_v31 = vld [vmem:[%s831_s1 + $0xb8] sm:$0xff]  }
   0xd   :  { %561 = vmatpush3.bf16.msra.mxu1 %v598_v11  ;;  %534 = vmatprep.subr.bf16.mxu0 %v599_v12  ;;  %v619_v32 = vld [vmem:[%s830_s0] ss:$16 sps:$4 sm:$0xff]   ;;  %v621_v33 = vld [vmem:[%s830_s0 + $0x4] ss:$16 sps:$4 sm:$0xff]   ;;  %v622_v34 = vld [vmem:[%s830_s0 + $0x8] ss:$16 sps:$4 sm:$0xff]  }
   0xe   :  { %562 = vmatprep.subr.bf16.mxu1 %v600_v13  ;;  %v624_v35 = vld [vmem:[%s830_s0 + $0xc] ss:$16 sps:$4 sm:$0xff]   ;;  %367 = vmatprep.mubr.bf16.mxu0 %v621_v33  ;;  %v625_v36 = vld [vmem:[%s830_s0 + $0x24] ss:$16 sps:$4 sm:$0xff]  }
   0xf   :  { %416 = vmatprep.mubr.bf16.mxu1 %v624_v35  ;;  %v627_v37 = vld [vmem:[%s830_s0 + $0x2c] ss:$16 sps:$4 sm:$0xff]  }
  0x10   :  { %535 = vmatpush3.bf16.msra.mxu0 %v601_v14 }
  0x11   :  { %563 = vmatpush3.bf16.msra.mxu1 %v602_v15  ;;  %536 = vmatprep.subr.bf16.mxu0 %v603_v16 }
  0x12   :  { %564 = vmatprep.subr.bf16.mxu1 %v604_v17 }
  0x14   :  { %537 = vmatpush3.bf16.msra.mxu0 %v605_v18 }
  0x15   :  { %565 = vmatpush3.bf16.msra.mxu1 %v606_v19  ;;  %538 = vmatprep.subr.bf16.mxu0 %v607_v20 }
  0x16   :  { %566 = vmatprep.subr.bf16.mxu1 %v608_v21 }
  0x18   :  { %539 = vmatpush3.bf16.msra.mxu0 %v609_v22 }
  0x19   :  { %567 = vmatpush3.bf16.msra.mxu1 %v610_v23  ;;  %540 = vmatprep.subr.bf16.mxu0 %v611_v24 }
  0x1a   :  { %568 = vmatprep.subr.bf16.mxu1 %v612_v25 }
  0x1c   :  { %541 = vmatpush3.bf16.msra.mxu0 %v613_v26 }
  0x1d   :  { %569 = vmatpush3.bf16.msra.mxu1 %v614_v27  ;;  %542 = vmatprep.subr.bf16.mxu0 %v615_v28 }
  0x1e   :  { %570 = vmatprep.subr.bf16.mxu1 %v616_v29 }
  0x20   :  { %543 = vmatpush3.bf16.msra.mxu0 %v617_v30 }
  0x21   :  { %571 = vmatpush3.bf16.msra.mxu1 %v618_v31 }
  0x23   :  { %368 = vmatmul.mubr.bf16.vlgmr.msra.gmra.mrb[0].mxu0 %v619_v32 }
  0x24   :  { %417 = vmatmul.mubr.bf16.vlgmr.msra.gmra.mrb[0].mxu1 %v622_v34  ;;  %375 = vmatprep.mubr.bf16.mxu0 %v625_v36 }
  0x25   :  { %9 = vsyncpa [#allocation4], 0  ;;  %424 = vmatprep.mubr.bf16.mxu1 %v627_v37  ;;  %v629_v38 = vld [vmem:[%s830_s0 + $0x20] ss:$16 sps:$4 sm:$0xff]   ;;  %v630_v39 = vld [vmem:[%s830_s0 + $0x28] ss:$16 sps:$4 sm:$0xff]  }
  0x26   :  { %v527_v49 = vld [vmem:[%s832_s2] ss:$0 sm:$0xff]  ;;  %v460_v57 = vld [vmem:[%s833_s3 + $0x8] sm:$0xff]  ;;  %v461_v10 = vld [vmem:[%s833_s3 + $0x10] sm:$0xff]  ;;  %s655_s22 = smov [#allocation3]  }
  0x27   :  { %v459_v54 = vld [vmem:[%s833_s3] sm:$0xff]  ;;  %s476_s23 = sshll.u32 %s655_s22, 4  ;;  %v462_v13 = vld [vmem:[%s833_s3 + $0x18] sm:$0xff]  ;;  %s477_s23 = int_to_ptr.vmem [resolvable:$true] %s476_s23 }
  0x28   :  { %s631_s26 = scalar_lea.vmem %s477_s23, 512  ;;  %p636_p1 = scmp.lt.s32.totalorder %s477_s23, %s477_s23 }
  0x29   :  { %p632_p0 = scmp.ne.s32.totalorder %s477_s23, %s631_s26  ;;  %p637_p2 = scmp.lt.s32.totalorder %s631_s26, %s631_s26 }
  0x2b   :  { %376 = vmatmul.mubr.bf16.gmra.mrb[4].mxu0 %v629_v38  ;;  %p638_p3 = por %p637_p2, %p636_p1 }
  0x2c   :  { %425 = vmatmul.mubr.bf16.gmra.mrb[4].mxu1 %v630_v39 }
  0x2d   :  { %p639_p4 = pnand %p638_p3, %p632_p0 }
  0xf6   :  { %v544_v40 = vpop.f32.mrb[0].mxu0 }
  0xf7   :  { %v572_v41 = vpop.f32.mrb[0].mxu1  ;;  %v545_v42 = vpop.f32.mrb[1].mxu0 }
  0xf8   :  { %v546_v43 = vadd.f32 %v545_v42, %v544_v40  ;;  %v573_v44 = vpop.f32.mrb[1].mxu1  ;;  %v547_v45 = vpop.f32.mrb[2].mxu0 }
  0xf9   :  { %v574_v46 = vadd.f32 %v573_v44, %v572_v41  ;;  %v575_v47 = vpop.f32.mrb[2].mxu1  ;;  %v548_v48 = vpop.f32.mrb[3].mxu0 }
  0xfa   :  { %v549_v50 = vadd.f32 %v548_v48, %v547_v45  ;;  %v576_v51 = vpop.f32.mrb[3].mxu1 }
  0xfb   :  { %v419_v52 = vadd.f32 %v574_v46, %v546_v43  ;;  %v577_v53 = vadd.f32 %v576_v51, %v575_v47 }
  0xfd   :  { %v455_v55 = vadd.f32 %v527_v49, %v419_v52  ;;  %v422_v56 = vadd.f32 %v577_v53, %v549_v50 }
  0xfe   :  { %v550_v58 = vpop.f32.mrb[4].mxu0 }
  0xff   :  { %v463_v59 = vadd.f32 %v459_v54, %v455_v55  ;;  %v456_v60 = vadd.f32 %v527_v49, %v422_v56  ;;  %v578_v61 = vpop.f32.mrb[4].mxu1  ;;  %v551_v62 = vpop.f32.mrb[5].mxu0 }
 0x100   :  { %v552_v63 = vadd.f32 %v551_v62, %v550_v58  ;;  %v579_v0 = vpop.f32.mrb[5].mxu1  ;;  %v553_v1 = vpop.f32.mrb[6].mxu0 }
 0x101   :  { %467 = vst [vmem:[#allocation3] sm:$0xff] %v463_v59  ;;  %v464_v2 = vadd.f32 %v460_v57, %v456_v60  ;;  %v580_v3 = vadd.f32 %v579_v0, %v578_v61  ;;  %v581_v4 = vpop.f32.mrb[6].mxu1  ;;  %v554_v5 = vpop.f32.mrb[7].mxu0 }
 0x102   :  { %v555_v6 = vadd.f32 %v554_v5, %v553_v1  ;;  %v582_v7 = vpop.f32.mrb[7].mxu1 }
 0x103   :  { %468 = vst [vmem:[#allocation3 + $0x8] sm:$0xff] %v464_v2  ;;  %v427_v8 = vadd.f32 %v580_v3, %v552_v63  ;;  %v583_v9 = vadd.f32 %v582_v7, %v581_v4 }
 0x105   :  { %v457_v11 = vadd.f32 %v527_v49, %v427_v8  ;;  %v430_v12 = vadd.f32 %v583_v9, %v555_v6 }
 0x107   :  { %v465_v14 = vadd.f32 %v461_v10, %v457_v11  ;;  %v458_v15 = vadd.f32 %v527_v49, %v430_v12 }
 0x109   :  { %469 = vst [vmem:[#allocation3 + $0x10] sm:$0xff] %v465_v14  ;;  %v466_v16 = vadd.f32 %v462_v13, %v458_v15 }
 0x10b   :  { %470 = vst [vmem:[#allocation3 + $0x18] sm:$0xff] %v466_v16 }
 0x10c   :  { %642 = shalt.err (!%p639_p4)
}
 0x10d   :  { %s643_s29 = scalar_lea.hbm %s834_s4, 512 }
 0x10e   :  { %p644_p5 = scmp.ne.s32.totalorder %s834_s4, %s643_s29  ;;  %p647_p6 = scmp.lt.u32.totalorder %s643_s29, %s834_s4 }
 0x110   :  { %p649_p7 = pnand %p647_p6, %p644_p5 }
 0x112   :  { %652 = shalt.err (!%p649_p7)
}
 0x113   :  { %s656_s7 = smov 128   ;;  %s657_s8 = smov 8  }
 0x114   :  { %482 = dma.vmem_to_hbm [thread:$0]  %s477_s23, 512, %s834_s4, [#allocation4], %s656_s7, %s656_s7, %s657_s8  }
 0x115   :  { %653 = dma.done.wait [#allocation4], 512  }
 0x116   :  { %654 = vsyncadd [#allocation4], 4294966784 }
 0x117   :  { %486 = vsyncpa [#allocation4], 1 }

</bundles_post_ra>
